<compile_context>
chip_gen: v6e
topology: v6e:2x2x1
jax: 0.10.0
libtpu: 0.0.40
codegen_flags: <defaults>
</compile_context>

<pallas_src>
import functools

import jax
import jax.numpy as jnp
from jax.experimental import pallas as pl
from jax.experimental.pallas import tpu as pltpu


# ----------------------------------------------------------------------------
# Static network configuration (pure Python ints — never traced)
# ----------------------------------------------------------------------------
def build_layer_config(init_conv, init_maxpool, blocks, n_length):
    cfg = {}
    K0, s0, P0 = init_conv["kernel_size"], init_conv["stride"], init_conv["padding"]
    pk, ps = init_maxpool["kernel_size"], init_maxpool["stride"]
    l_conv = (n_length + 2 * P0 - K0) // s0 + 1
    l_pool = (l_conv - pk) // ps + 1
    cfg["stem"] = dict(cin=init_conv["in_channels"], cout=init_conv["base_filters"],
                       K=K0, stride=s0, pad=P0, pool_k=pk, pool_s=ps,
                       l_in=n_length, l_out=l_pool)
    cfg["blocks"] = []
    cin, l = init_conv["base_filters"], l_pool
    for block in blocks:
        for i_block in range(block["n"]):
            b_cin = block["in_channels"] if i_block == 0 else block["base_filters"]
            cout = block["base_filters"]
            K, stride = block["kernel_size"], block["stride"]
            pad = K // 2                                   # assumes odd kernel_size ("same")
            l_out = (l + 2 * pad - K) // stride + 1
            cfg["blocks"].append(dict(cin=b_cin, cout=cout, K=K, stride=stride, pad=pad,
                                      l_in=l, l_out=l_out,
                                      shortcut=(b_cin != cout or stride != 1)))
            cin, l = cout, l_out
    cfg["final_c"], cfg["final_l"] = cin, l
    return cfg


# ----------------------------------------------------------------------------
# In-kernel helpers
# ----------------------------------------------------------------------------
def _selection(cache, l_in, l_out, stride, offset):
    """Exact 0/1 (l_in, l_out) matrix: S[j, t] = (j == stride * t + offset).

    Multiplying by it realises a strided / shifted / zero-padded tap view with one MXU matmul
    (out-of-range indices map to all-zero columns == zero padding)."""
    key = (l_in, l_out, stride, offset)
    if key not in cache:
        j = jax.lax.broadcasted_iota(jnp.int32, (l_in, l_out), 0)
        t = jax.lax.broadcasted_iota(jnp.int32, (l_in, l_out), 1)
        cache[key] = (j == stride * t + offset).astype(jnp.bfloat16)
    return cache[key]


def _tap(cache, x_bf, l_out, stride, offset):
    """x_bf (C, l_in) bf16 -> (C, l_out) bf16 view x_padded[:, stride*t + offset] (zeros outside)."""
    l_in = x_bf.shape[-1]
    if stride == 1 and offset == 0 and l_out == l_in:       # center tap of a stride-1 conv
        return x_bf
    sel = _selection(cache, l_in, l_out, stride, offset)
    return jnp.dot(x_bf, sel, preferred_element_type=jnp.float32).astype(jnp.bfloat16)


def _make_net_kernel(cfg, finalpool):
    stem = cfg["stem"]
    blocks = cfg["blocks"]

    def kernel(*refs):
        pos = 0

        def take(n):
            nonlocal pos
            out = refs[pos:pos + n]
            pos += n
            return out

        (x_ref,) = take(1)
        w0_ref, sc0_ref, sh0_ref = take(3)
        block_refs = [take(9 if bc["shortcut"] else 6) for bc in blocks]
        (o_ref,) = take(1)

        cache = {}   # selection-matrix memo (shared across layers)

        # ---------------- stem: Conv1d + BN + ReLU + MaxPool1d (fused) ----------------
        x32 = x_ref[0]                                # (Cin, L) f32
        x_bf = x32.astype(jnp.bfloat16)               # cast once
        s_eff = stem["stride"] * stem["pool_s"]
        scale0, shift0 = sc0_ref[...], sh0_ref[...]
        pooled = None
        taps = {}
        for j in range(stem["pool_k"]):               # maxpool window position
            acc = jnp.zeros((stem["cout"], stem["l_out"]), jnp.float32)
            for k in range(stem["K"]):                # conv tap
                off = stem["stride"] * j + k - stem["pad"]
                if off not in taps:
                    taps[off] = _tap(cache, x_bf, stem["l_out"], s_eff, off)
                acc = acc + jnp.dot(w0_ref[k], taps[off],
                                    preferred_element_type=jnp.float32)
            h = jnp.maximum(acc * scale0 + shift0, 0.0)
            pooled = h if pooled is None else jnp.maximum(pooled, h)
        act = pooled                                  # (C0, l_pool) f32 — stays in registers

        # ---------------- residual blocks (each fully fused, no HBM traffic) ----------------
        for bc, brefs in zip(blocks, block_refs):
            if bc["shortcut"]:
                w1, s1, b1, w2, s2, b2, wsc, ssc, bsc = brefs
            else:
                w1, s1, b1, w2, s2, b2 = brefs
            act_bf = act.astype(jnp.bfloat16)         # cast once per layer

            # conv1 + BN + ReLU  (stride = bc["stride"], 'same' padding)
            acc = jnp.zeros((bc["cout"], bc["l_out"]), jnp.float32)
            taps1 = {}
            for k in range(bc["K"]):
                off = k - bc["pad"]
                if off not in taps1:
                    taps1[off] = _tap(cache, act_bf, bc["l_out"], bc["stride"], off)
                acc = acc + jnp.dot(w1[k], taps1[off], preferred_element_type=jnp.float32)
            h1 = jnp.maximum(acc * s1[...] + b1[...], 0.0)
            h1_bf = h1.astype(jnp.bfloat16)           # h1 never leaves registers

            # conv2 + BN  (stride 1, 'same' padding)
            acc2 = jnp.zeros((bc["cout"], bc["l_out"]), jnp.float32)
            taps2 = {}
            for k in range(bc["K"]):
                off = k - bc["pad"]
                if off not in taps2:
                    taps2[off] = _tap(cache, h1_bf, bc["l_out"], 1, off)
                acc2 = acc2 + jnp.dot(w2[k], taps2[off], preferred_element_type=jnp.float32)
            y = acc2 * s2[...] + b2[...]

            # shortcut / identity
            if bc["shortcut"]:
                xd = taps1[0] if 0 in taps1 else _tap(cache, act_bf, bc["l_out"], bc["stride"], 0)
                idv = jnp.dot(wsc[...], xd, preferred_element_type=jnp.float32)
                idv = idv * ssc[...] + bsc[...]
            else:                                     # stride==1, cin==cout: exact f32 identity
                idv = act
            act = jnp.maximum(y + idv, 0.0)

        # ---------------- final pooling (fused) ----------------
        if finalpool == "avg":
            emb = jnp.mean(act, axis=-1, keepdims=True)   # (Cf, 1)
        else:                                             # "max" == torch.max(x, dim=-1)[0]
            emb = jnp.max(act, axis=-1, keepdims=True)
        o_ref[0] = emb

    return kernel


# ----------------------------------------------------------------------------
# Wrapper: BN folding + single pallas_call over the batch grid
# ----------------------------------------------------------------------------
def _fold_bn(conv_bias, bn, eps=1e-5):
    gamma, beta, mean, var = bn
    scale = gamma * jax.lax.rsqrt(var + eps)
    shift = scale * (conv_bias - mean) + beta
    return scale[:, None].astype(jnp.float32), shift[:, None].astype(jnp.float32)


def _conv_weight_taps(w):
    # (Cout, Cin, K) -> (K, Cout, Cin) bf16
    return jnp.transpose(w, (2, 0, 1)).astype(jnp.bfloat16)


def net_forward(x, params, cfg, finalpool):
    if finalpool not in ("avg", "max"):
        raise ValueError("invalid pool")
    N, Cin, L = x.shape
    stem = cfg["stem"]
    assert (Cin, L) == (stem["cin"], stem["l_in"])

    inputs = [x]
    in_specs = [pl.BlockSpec((1, Cin, L), lambda n: (n, 0, 0))]

    def add_weight(arr):
        inputs.append(arr)
        nd = arr.ndim
        in_specs.append(pl.BlockSpec(arr.shape, lambda n, _nd=nd: (0,) * _nd))

    p0 = params["stem"]
    add_weight(_conv_weight_taps(p0["w"]))
    s0, b0 = _fold_bn(p0["b"], p0["bn"])
    add_weight(s0); add_weight(b0)

    for bc, bp in zip(cfg["blocks"], params["blocks"]):
        add_weight(_conv_weight_taps(bp["conv1"]["w"]))
        s1, b1 = _fold_bn(bp["conv1"]["b"], bp["conv1"]["bn"])
        add_weight(s1); add_weight(b1)
        add_weight(_conv_weight_taps(bp["conv2"]["w"]))
        s2, b2 = _fold_bn(bp["conv2"]["b"], bp["conv2"]["bn"])
        add_weight(s2); add_weight(b2)
        if bc["shortcut"]:
            add_weight(bp["shortcut"]["w"][:, :, 0].astype(jnp.bfloat16))   # (Cout, Cin)
            ssc, bsc = _fold_bn(bp["shortcut"]["b"], bp["shortcut"]["bn"])
            add_weight(ssc); add_weight(bsc)

    Cf = cfg["final_c"]

    # Rough cost estimate (advisory only)
    st = stem
    n_off = len({st["stride"] * j + k for j in range(st["pool_k"]) for k in range(st["K"])})
    flops = 2 * n_off * st["cin"] * st["l_in"] * st["l_out"]
    flops += 2 * st["pool_k"] * st["K"] * st["cout"] * st["cin"] * st["l_out"]
    for bc in cfg["blocks"]:
        flops += 2 * bc["K"] * (bc["cin"] * bc["l_in"] + bc["cout"] * bc["cin"]) * bc["l_out"]
        flops += 2 * bc["K"] * (bc["cout"] * bc["l_out"] + bc["cout"] * bc["cout"]) * bc["l_out"]
        if bc["shortcut"]:
            flops += 2 * bc["cout"] * bc["cin"] * bc["l_out"]
    flops = int(flops * N)
    bytes_acc = int(sum(int(a.size) * a.dtype.itemsize for a in inputs) + N * Cf * 4)

    out3 = pl.pallas_call(
        _make_net_kernel(cfg, finalpool),
        out_shape=jax.ShapeDtypeStruct((N, Cf, 1), jnp.float32),
        grid_spec=pltpu.PrefetchScalarGridSpec(
            num_scalar_prefetch=0,
            grid=(N,),
            in_specs=in_specs,
            out_specs=pl.BlockSpec((1, Cf, 1), lambda n: (n, 0, 0)),
        ),
        compiler_params=pltpu.CompilerParams(
            dimension_semantics=("parallel",),
            vmem_limit_bytes=64 * 1024 * 1024,
        ),
        cost_estimate=pl.CostEstimate(flops=flops, transcendentals=0,
                                      bytes_accessed=bytes_acc),
    )(*inputs)
    return out3[:, :, 0]


# ----------------------------------------------------------------------------
# Deterministic synthetic parameters (arrays only — no ints in the pytree)
# ----------------------------------------------------------------------------
def _init_conv_bn(key, cout, cin, k):
    k1, k2, k3, k4, k5, k6 = jax.random.split(key, 6)
    w = jax.random.normal(k1, (cout, cin, k), jnp.float32) * 0.1
    b = jax.random.normal(k2, (cout,), jnp.float32) * 0.1
    gamma = jax.random.uniform(k3, (cout,), jnp.float32, minval=0.5, maxval=1.5)
    beta = jax.random.normal(k4, (cout,), jnp.float32) * 0.1
    mean = jax.random.normal(k5, (cout,), jnp.float32) * 0.1
    var = jax.random.uniform(k6, (cout,), jnp.float32, minval=0.5, maxval=1.5)
    return {"w": w, "b": b, "bn": (gamma, beta, mean, var)}


def init_params(key, cfg):
    key, k0 = jax.random.split(key)
    st = cfg["stem"]
    params = {"stem": _init_conv_bn(k0, st["cout"], st["cin"], st["K"]), "blocks": []}
    for bc in cfg["blocks"]:
        key, k1, k2, k3 = jax.random.split(key, 4)
        bp = {"conv1": _init_conv_bn(k1, bc["cout"], bc["cin"], bc["K"]),
              "conv2": _init_conv_bn(k2, bc["cout"], bc["cout"], bc["K"])}
        if bc["shortcut"]:
            bp["shortcut"] = _init_conv_bn(k3, bc["cout"], bc["cin"], 1)
        params["blocks"].append(bp)
    return params


# ----------------------------------------------------------------------------
if __name__ == "__main__":
    finalpool = "avg"
    init_conv = {"in_channels": 3, "base_filters": 8, "kernel_size": 7,
                 "stride": 2, "padding": 3}
    init_maxpool = {"kernel_size": 2, "stride": 2}
    blocks = [
        {"n": 2, "in_channels": 8, "base_filters": 8, "kernel_size": 3, "stride": 1},
        {"n": 1, "in_channels": 8, "base_filters": 16, "kernel_size": 3, "stride": 2},
    ]
    n_samples, n_length = 2, 64

    cfg = build_layer_config(init_conv, init_maxpool, blocks, n_length)

    key = jax.random.PRNGKey(0)
    kx, kp = jax.random.split(key)
    x = jax.random.normal(kx, (n_samples, init_conv["in_channels"], n_length), jnp.float32)
    params = init_params(kp, cfg)

    fwd = jax.jit(functools.partial(net_forward, cfg=cfg, finalpool=finalpool))
    out = jax.block_until_ready(fwd(x, params))
    assert out.shape == (n_samples, cfg["final_c"]), out.shape
    assert bool(jnp.all(jnp.isfinite(out)))
    print("KERNEL_OK")
</pallas_src>

<mosaic_0001>
module attributes {stable_mosaic.version = 11 : i64} {
  func.func @kernel(%arg0: i32, %arg1: memref<1x3x64xf32, #tpu.memory_space<vmem>>, %arg2: memref<7x8x3xbf16, #tpu.memory_space<vmem>>, %arg3: memref<8x1xf32, #tpu.memory_space<vmem>>, %arg4: memref<8x1xf32, #tpu.memory_space<vmem>>, %arg5: memref<3x8x8xbf16, #tpu.memory_space<vmem>>, %arg6: memref<8x1xf32, #tpu.memory_space<vmem>>, %arg7: memref<8x1xf32, #tpu.memory_space<vmem>>, %arg8: memref<3x8x8xbf16, #tpu.memory_space<vmem>>, %arg9: memref<8x1xf32, #tpu.memory_space<vmem>>, %arg10: memref<8x1xf32, #tpu.memory_space<vmem>>, %arg11: memref<3x8x8xbf16, #tpu.memory_space<vmem>>, %arg12: memref<8x1xf32, #tpu.memory_space<vmem>>, %arg13: memref<8x1xf32, #tpu.memory_space<vmem>>, %arg14: memref<3x8x8xbf16, #tpu.memory_space<vmem>>, %arg15: memref<8x1xf32, #tpu.memory_space<vmem>>, %arg16: memref<8x1xf32, #tpu.memory_space<vmem>>, %arg17: memref<3x16x8xbf16, #tpu.memory_space<vmem>>, %arg18: memref<16x1xf32, #tpu.memory_space<vmem>>, %arg19: memref<16x1xf32, #tpu.memory_space<vmem>>, %arg20: memref<3x16x16xbf16, #tpu.memory_space<vmem>>, %arg21: memref<16x1xf32, #tpu.memory_space<vmem>>, %arg22: memref<16x1xf32, #tpu.memory_space<vmem>>, %arg23: memref<16x8xbf16, #tpu.memory_space<vmem>>, %arg24: memref<16x1xf32, #tpu.memory_space<vmem>>, %arg25: memref<16x1xf32, #tpu.memory_space<vmem>>, %arg26: memref<1x16x1xf32, #tpu.memory_space<vmem>>) attributes {dimension_semantics = [#tpu.dimension_semantics<parallel>], iteration_bounds = array<i64: 2>, scalar_prefetch = 0 : i64, scratch_operands = 0 : i64, tpu.core_type = #tpu.core_type<tc>, window_params = [{transform_indices = @transform_0, window_bounds = array<i64: 1, 3, 64>}, {pipeline_mode = #tpu.pipeline_mode<synchronous>, transform_indices = @transform_1, window_bounds = array<i64: 7, 8, 3>}, {pipeline_mode = #tpu.pipeline_mode<synchronous>, transform_indices = @transform_2, window_bounds = array<i64: 8, 1>}, {pipeline_mode = #tpu.pipeline_mode<synchronous>, transform_indices = @transform_3, window_bounds = array<i64: 8, 1>}, {pipeline_mode = #tpu.pipeline_mode<synchronous>, transform_indices = @transform_4, window_bounds = array<i64: 3, 8, 8>}, {pipeline_mode = #tpu.pipeline_mode<synchronous>, transform_indices = @transform_5, window_bounds = array<i64: 8, 1>}, {pipeline_mode = #tpu.pipeline_mode<synchronous>, transform_indices = @transform_6, window_bounds = array<i64: 8, 1>}, {pipeline_mode = #tpu.pipeline_mode<synchronous>, transform_indices = @transform_7, window_bounds = array<i64: 3, 8, 8>}, {pipeline_mode = #tpu.pipeline_mode<synchronous>, transform_indices = @transform_8, window_bounds = array<i64: 8, 1>}, {pipeline_mode = #tpu.pipeline_mode<synchronous>, transform_indices = @transform_9, window_bounds = array<i64: 8, 1>}, {pipeline_mode = #tpu.pipeline_mode<synchronous>, transform_indices = @transform_10, window_bounds = array<i64: 3, 8, 8>}, {pipeline_mode = #tpu.pipeline_mode<synchronous>, transform_indices = @transform_11, window_bounds = array<i64: 8, 1>}, {pipeline_mode = #tpu.pipeline_mode<synchronous>, transform_indices = @transform_12, window_bounds = array<i64: 8, 1>}, {pipeline_mode = #tpu.pipeline_mode<synchronous>, transform_indices = @transform_13, window_bounds = array<i64: 3, 8, 8>}, {pipeline_mode = #tpu.pipeline_mode<synchronous>, transform_indices = @transform_14, window_bounds = array<i64: 8, 1>}, {pipeline_mode = #tpu.pipeline_mode<synchronous>, transform_indices = @transform_15, window_bounds = array<i64: 8, 1>}, {pipeline_mode = #tpu.pipeline_mode<synchronous>, transform_indices = @transform_16, window_bounds = array<i64: 3, 16, 8>}, {pipeline_mode = #tpu.pipeline_mode<synchronous>, transform_indices = @transform_17, window_bounds = array<i64: 16, 1>}, {pipeline_mode = #tpu.pipeline_mode<synchronous>, transform_indices = @transform_18, window_bounds = array<i64: 16, 1>}, {pipeline_mode = #tpu.pipeline_mode<synchronous>, transform_indices = @transform_19, window_bounds = array<i64: 3, 16, 16>}, {pipeline_mode = #tpu.pipeline_mode<synchronous>, transform_indices = @transform_20, window_bounds = array<i64: 16, 1>}, {pipeline_mode = #tpu.pipeline_mode<synchronous>, transform_indices = @transform_21, window_bounds = array<i64: 16, 1>}, {pipeline_mode = #tpu.pipeline_mode<synchronous>, transform_indices = @transform_22, window_bounds = array<i64: 16, 8>}, {pipeline_mode = #tpu.pipeline_mode<synchronous>, transform_indices = @transform_23, window_bounds = array<i64: 16, 1>}, {pipeline_mode = #tpu.pipeline_mode<synchronous>, transform_indices = @transform_24, window_bounds = array<i64: 16, 1>}, {transform_indices = @transform_25, window_bounds = array<i64: 1, 16, 1>}]} {
    %c0 = arith.constant 0 : index
    %c0_0 = arith.constant 0 : index
    %c0_1 = arith.constant 0 : index
    %0 = vector.load %arg1[%c0, %c0_0, %c0_1] : memref<1x3x64xf32, #tpu.memory_space<vmem>>, vector<1x3x64xf32>
    %1 = vector.shape_cast %0 : vector<1x3x64xf32> to vector<3x64xf32>
    %2 = arith.truncf %1 : vector<3x64xf32> to vector<3x64xbf16>
    %c0_2 = arith.constant 0 : index
    %c0_3 = arith.constant 0 : index
    %3 = vector.load %arg3[%c0_2, %c0_3] : memref<8x1xf32, #tpu.memory_space<vmem>>, vector<8x1xf32>
    %c0_4 = arith.constant 0 : index
    %c0_5 = arith.constant 0 : index
    %4 = vector.load %arg4[%c0_4, %c0_5] : memref<8x1xf32, #tpu.memory_space<vmem>>, vector<8x1xf32>
    %cst = arith.constant 0.000000e+00 : f32
    %5 = vector.broadcast %cst : f32 to vector<8x16xf32>
    %6 = tpu.iota {dimensions = array<i32: 0>} : vector<64x16xi32>
    %7 = tpu.iota {dimensions = array<i32: 1>} : vector<64x16xi32>
    %c4_i32 = arith.constant 4 : i32
    %8 = vector.broadcast %c4_i32 : i32 to vector<64x16xi32>
    %9 = arith.muli %8, %7 : vector<64x16xi32>
    %c-3_i32 = arith.constant -3 : i32
    %10 = vector.broadcast %c-3_i32 : i32 to vector<64x16xi32>
    %11 = arith.addi %9, %10 : vector<64x16xi32>
    %12 = arith.cmpi eq, %6, %11 : vector<64x16xi32>
    %13 = arith.extui %12 : vector<64x16xi1> to vector<64x16xi32>
    %14 = arith.sitofp %13 : vector<64x16xi32> to vector<64x16xf32>
    %15 = arith.truncf %14 : vector<64x16xf32> to vector<64x16xbf16>
    %cst_6 = arith.constant dense<0.000000e+00> : vector<3x16xf32>
    %16 = tpu.matmul %2, %15, %cst_6 {dimension_numbers = #tpu.dot_dimension_numbers<[1], [0], [0], [1], [0, 0, 1, 1], [], []>} : vector<3x64xbf16>, vector<64x16xbf16>, vector<3x16xf32> -> vector<3x16xf32>
    %17 = arith.truncf %16 : vector<3x16xf32> to vector<3x16xbf16>
    %c0_7 = arith.constant 0 : index
    %c0_8 = arith.constant 0 : index
    %c0_9 = arith.constant 0 : index
    %18 = vector.load %arg2[%c0_7, %c0_8, %c0_9] : memref<7x8x3xbf16, #tpu.memory_space<vmem>>, vector<1x8x3xbf16>
    %19 = vector.shape_cast %18 : vector<1x8x3xbf16> to vector<8x3xbf16>
    %cst_10 = arith.constant dense<0.000000e+00> : vector<8x16xf32>
    %20 = tpu.matmul %19, %17, %cst_10 {dimension_numbers = #tpu.dot_dimension_numbers<[1], [0], [0], [1], [0, 0, 1, 1], [], []>} : vector<8x3xbf16>, vector<3x16xbf16>, vector<8x16xf32> -> vector<8x16xf32>
    %21 = arith.addf %5, %20 : vector<8x16xf32>
    %22 = tpu.iota {dimensions = array<i32: 0>} : vector<64x16xi32>
    %23 = tpu.iota {dimensions = array<i32: 1>} : vector<64x16xi32>
    %c4_i32_11 = arith.constant 4 : i32
    %24 = vector.broadcast %c4_i32_11 : i32 to vector<64x16xi32>
    %25 = arith.muli %24, %23 : vector<64x16xi32>
    %c-2_i32 = arith.constant -2 : i32
    %26 = vector.broadcast %c-2_i32 : i32 to vector<64x16xi32>
    %27 = arith.addi %25, %26 : vector<64x16xi32>
    %28 = arith.cmpi eq, %22, %27 : vector<64x16xi32>
    %29 = arith.extui %28 : vector<64x16xi1> to vector<64x16xi32>
    %30 = arith.sitofp %29 : vector<64x16xi32> to vector<64x16xf32>
    %31 = arith.truncf %30 : vector<64x16xf32> to vector<64x16xbf16>
    %cst_12 = arith.constant dense<0.000000e+00> : vector<3x16xf32>
    %32 = tpu.matmul %2, %31, %cst_12 {dimension_numbers = #tpu.dot_dimension_numbers<[1], [0], [0], [1], [0, 0, 1, 1], [], []>} : vector<3x64xbf16>, vector<64x16xbf16>, vector<3x16xf32> -> vector<3x16xf32>
    %33 = arith.truncf %32 : vector<3x16xf32> to vector<3x16xbf16>
    %c1 = arith.constant 1 : index
    %c0_13 = arith.constant 0 : index
    %c0_14 = arith.constant 0 : index
    %34 = vector.load %arg2[%c1, %c0_13, %c0_14] : memref<7x8x3xbf16, #tpu.memory_space<vmem>>, vector<1x8x3xbf16>
    %35 = vector.shape_cast %34 : vector<1x8x3xbf16> to vector<8x3xbf16>
    %cst_15 = arith.constant dense<0.000000e+00> : vector<8x16xf32>
    %36 = tpu.matmul %35, %33, %cst_15 {dimension_numbers = #tpu.dot_dimension_numbers<[1], [0], [0], [1], [0, 0, 1, 1], [], []>} : vector<8x3xbf16>, vector<3x16xbf16>, vector<8x16xf32> -> vector<8x16xf32>
    %37 = arith.addf %21, %36 : vector<8x16xf32>
    %38 = tpu.iota {dimensions = array<i32: 0>} : vector<64x16xi32>
    %39 = tpu.iota {dimensions = array<i32: 1>} : vector<64x16xi32>
    %c4_i32_16 = arith.constant 4 : i32
    %40 = vector.broadcast %c4_i32_16 : i32 to vector<64x16xi32>
    %41 = arith.muli %40, %39 : vector<64x16xi32>
    %c-1_i32 = arith.constant -1 : i32
    %42 = vector.broadcast %c-1_i32 : i32 to vector<64x16xi32>
    %43 = arith.addi %41, %42 : vector<64x16xi32>
    %44 = arith.cmpi eq, %38, %43 : vector<64x16xi32>
    %45 = arith.extui %44 : vector<64x16xi1> to vector<64x16xi32>
    %46 = arith.sitofp %45 : vector<64x16xi32> to vector<64x16xf32>
    %47 = arith.truncf %46 : vector<64x16xf32> to vector<64x16xbf16>
    %cst_17 = arith.constant dense<0.000000e+00> : vector<3x16xf32>
    %48 = tpu.matmul %2, %47, %cst_17 {dimension_numbers = #tpu.dot_dimension_numbers<[1], [0], [0], [1], [0, 0, 1, 1], [], []>} : vector<3x64xbf16>, vector<64x16xbf16>, vector<3x16xf32> -> vector<3x16xf32>
    %49 = arith.truncf %48 : vector<3x16xf32> to vector<3x16xbf16>
    %c2 = arith.constant 2 : index
    %c0_18 = arith.constant 0 : index
    %c0_19 = arith.constant 0 : index
    %50 = vector.load %arg2[%c2, %c0_18, %c0_19] : memref<7x8x3xbf16, #tpu.memory_space<vmem>>, vector<1x8x3xbf16>
    %51 = vector.shape_cast %50 : vector<1x8x3xbf16> to vector<8x3xbf16>
    %cst_20 = arith.constant dense<0.000000e+00> : vector<8x16xf32>
    %52 = tpu.matmul %51, %49, %cst_20 {dimension_numbers = #tpu.dot_dimension_numbers<[1], [0], [0], [1], [0, 0, 1, 1], [], []>} : vector<8x3xbf16>, vector<3x16xbf16>, vector<8x16xf32> -> vector<8x16xf32>
    %53 = arith.addf %37, %52 : vector<8x16xf32>
    %54 = tpu.iota {dimensions = array<i32: 0>} : vector<64x16xi32>
    %55 = tpu.iota {dimensions = array<i32: 1>} : vector<64x16xi32>
    %c4_i32_21 = arith.constant 4 : i32
    %56 = vector.broadcast %c4_i32_21 : i32 to vector<64x16xi32>
    %57 = arith.muli %56, %55 : vector<64x16xi32>
    %c0_i32 = arith.constant 0 : i32
    %58 = vector.broadcast %c0_i32 : i32 to vector<64x16xi32>
    %59 = arith.addi %57, %58 : vector<64x16xi32>
    %60 = arith.cmpi eq, %54, %59 : vector<64x16xi32>
    %61 = arith.extui %60 : vector<64x16xi1> to vector<64x16xi32>
    %62 = arith.sitofp %61 : vector<64x16xi32> to vector<64x16xf32>
    %63 = arith.truncf %62 : vector<64x16xf32> to vector<64x16xbf16>
    %cst_22 = arith.constant dense<0.000000e+00> : vector<3x16xf32>
    %64 = tpu.matmul %2, %63, %cst_22 {dimension_numbers = #tpu.dot_dimension_numbers<[1], [0], [0], [1], [0, 0, 1, 1], [], []>} : vector<3x64xbf16>, vector<64x16xbf16>, vector<3x16xf32> -> vector<3x16xf32>
    %65 = arith.truncf %64 : vector<3x16xf32> to vector<3x16xbf16>
    %c3 = arith.constant 3 : index
    %c0_23 = arith.constant 0 : index
    %c0_24 = arith.constant 0 : index
    %66 = vector.load %arg2[%c3, %c0_23, %c0_24] : memref<7x8x3xbf16, #tpu.memory_space<vmem>>, vector<1x8x3xbf16>
    %67 = vector.shape_cast %66 : vector<1x8x3xbf16> to vector<8x3xbf16>
    %cst_25 = arith.constant dense<0.000000e+00> : vector<8x16xf32>
    %68 = tpu.matmul %67, %65, %cst_25 {dimension_numbers = #tpu.dot_dimension_numbers<[1], [0], [0], [1], [0, 0, 1, 1], [], []>} : vector<8x3xbf16>, vector<3x16xbf16>, vector<8x16xf32> -> vector<8x16xf32>
    %69 = arith.addf %53, %68 : vector<8x16xf32>
    %70 = tpu.iota {dimensions = array<i32: 0>} : vector<64x16xi32>
    %71 = tpu.iota {dimensions = array<i32: 1>} : vector<64x16xi32>
    %c4_i32_26 = arith.constant 4 : i32
    %72 = vector.broadcast %c4_i32_26 : i32 to vector<64x16xi32>
    %73 = arith.muli %72, %71 : vector<64x16xi32>
    %c1_i32 = arith.constant 1 : i32
    %74 = vector.broadcast %c1_i32 : i32 to vector<64x16xi32>
    %75 = arith.addi %73, %74 : vector<64x16xi32>
    %76 = arith.cmpi eq, %70, %75 : vector<64x16xi32>
    %77 = arith.extui %76 : vector<64x16xi1> to vector<64x16xi32>
    %78 = arith.sitofp %77 : vector<64x16xi32> to vector<64x16xf32>
    %79 = arith.truncf %78 : vector<64x16xf32> to vector<64x16xbf16>
    %cst_27 = arith.constant dense<0.000000e+00> : vector<3x16xf32>
    %80 = tpu.matmul %2, %79, %cst_27 {dimension_numbers = #tpu.dot_dimension_numbers<[1], [0], [0], [1], [0, 0, 1, 1], [], []>} : vector<3x64xbf16>, vector<64x16xbf16>, vector<3x16xf32> -> vector<3x16xf32>
    %81 = arith.truncf %80 : vector<3x16xf32> to vector<3x16xbf16>
    %c4 = arith.constant 4 : index
    %c0_28 = arith.constant 0 : index
    %c0_29 = arith.constant 0 : index
    %82 = vector.load %arg2[%c4, %c0_28, %c0_29] : memref<7x8x3xbf16, #tpu.memory_space<vmem>>, vector<1x8x3xbf16>
    %83 = vector.shape_cast %82 : vector<1x8x3xbf16> to vector<8x3xbf16>
    %cst_30 = arith.constant dense<0.000000e+00> : vector<8x16xf32>
    %84 = tpu.matmul %83, %81, %cst_30 {dimension_numbers = #tpu.dot_dimension_numbers<[1], [0], [0], [1], [0, 0, 1, 1], [], []>} : vector<8x3xbf16>, vector<3x16xbf16>, vector<8x16xf32> -> vector<8x16xf32>
    %85 = arith.addf %69, %84 : vector<8x16xf32>
    %86 = tpu.iota {dimensions = array<i32: 0>} : vector<64x16xi32>
    %87 = tpu.iota {dimensions = array<i32: 1>} : vector<64x16xi32>
    %c4_i32_31 = arith.constant 4 : i32
    %88 = vector.broadcast %c4_i32_31 : i32 to vector<64x16xi32>
    %89 = arith.muli %88, %87 : vector<64x16xi32>
    %c2_i32 = arith.constant 2 : i32
    %90 = vector.broadcast %c2_i32 : i32 to vector<64x16xi32>
    %91 = arith.addi %89, %90 : vector<64x16xi32>
    %92 = arith.cmpi eq, %86, %91 : vector<64x16xi32>
    %93 = arith.extui %92 : vector<64x16xi1> to vector<64x16xi32>
    %94 = arith.sitofp %93 : vector<64x16xi32> to vector<64x16xf32>
    %95 = arith.truncf %94 : vector<64x16xf32> to vector<64x16xbf16>
    %cst_32 = arith.constant dense<0.000000e+00> : vector<3x16xf32>
    %96 = tpu.matmul %2, %95, %cst_32 {dimension_numbers = #tpu.dot_dimension_numbers<[1], [0], [0], [1], [0, 0, 1, 1], [], []>} : vector<3x64xbf16>, vector<64x16xbf16>, vector<3x16xf32> -> vector<3x16xf32>
    %97 = arith.truncf %96 : vector<3x16xf32> to vector<3x16xbf16>
    %c5 = arith.constant 5 : index
    %c0_33 = arith.constant 0 : index
    %c0_34 = arith.constant 0 : index
    %98 = vector.load %arg2[%c5, %c0_33, %c0_34] : memref<7x8x3xbf16, #tpu.memory_space<vmem>>, vector<1x8x3xbf16>
    %99 = vector.shape_cast %98 : vector<1x8x3xbf16> to vector<8x3xbf16>
    %cst_35 = arith.constant dense<0.000000e+00> : vector<8x16xf32>
    %100 = tpu.matmul %99, %97, %cst_35 {dimension_numbers = #tpu.dot_dimension_numbers<[1], [0], [0], [1], [0, 0, 1, 1], [], []>} : vector<8x3xbf16>, vector<3x16xbf16>, vector<8x16xf32> -> vector<8x16xf32>
    %101 = arith.addf %85, %100 : vector<8x16xf32>
    %102 = tpu.iota {dimensions = array<i32: 0>} : vector<64x16xi32>
    %103 = tpu.iota {dimensions = array<i32: 1>} : vector<64x16xi32>
    %c4_i32_36 = arith.constant 4 : i32
    %104 = vector.broadcast %c4_i32_36 : i32 to vector<64x16xi32>
    %105 = arith.muli %104, %103 : vector<64x16xi32>
    %c3_i32 = arith.constant 3 : i32
    %106 = vector.broadcast %c3_i32 : i32 to vector<64x16xi32>
    %107 = arith.addi %105, %106 : vector<64x16xi32>
    %108 = arith.cmpi eq, %102, %107 : vector<64x16xi32>
    %109 = arith.extui %108 : vector<64x16xi1> to vector<64x16xi32>
    %110 = arith.sitofp %109 : vector<64x16xi32> to vector<64x16xf32>
    %111 = arith.truncf %110 : vector<64x16xf32> to vector<64x16xbf16>
    %cst_37 = arith.constant dense<0.000000e+00> : vector<3x16xf32>
    %112 = tpu.matmul %2, %111, %cst_37 {dimension_numbers = #tpu.dot_dimension_numbers<[1], [0], [0], [1], [0, 0, 1, 1], [], []>} : vector<3x64xbf16>, vector<64x16xbf16>, vector<3x16xf32> -> vector<3x16xf32>
    %113 = arith.truncf %112 : vector<3x16xf32> to vector<3x16xbf16>
    %c6 = arith.constant 6 : index
    %c0_38 = arith.constant 0 : index
    %c0_39 = arith.constant 0 : index
    %114 = vector.load %arg2[%c6, %c0_38, %c0_39] : memref<7x8x3xbf16, #tpu.memory_space<vmem>>, vector<1x8x3xbf16>
    %115 = vector.shape_cast %114 : vector<1x8x3xbf16> to vector<8x3xbf16>
    %cst_40 = arith.constant dense<0.000000e+00> : vector<8x16xf32>
    %116 = tpu.matmul %115, %113, %cst_40 {dimension_numbers = #tpu.dot_dimension_numbers<[1], [0], [0], [1], [0, 0, 1, 1], [], []>} : vector<8x3xbf16>, vector<3x16xbf16>, vector<8x16xf32> -> vector<8x16xf32>
    %117 = arith.addf %101, %116 : vector<8x16xf32>
    %118 = vector.broadcast %3 : vector<8x1xf32> to vector<8x16xf32>
    %119 = arith.mulf %117, %118 : vector<8x16xf32>
    %120 = vector.broadcast %4 : vector<8x1xf32> to vector<8x16xf32>
    %121 = arith.addf %119, %120 : vector<8x16xf32>
    %cst_41 = arith.constant 0.000000e+00 : f32
    %122 = vector.broadcast %cst_41 : f32 to vector<8x16xf32>
    %123 = arith.maximumf %121, %122 : vector<8x16xf32>
    %cst_42 = arith.constant 0.000000e+00 : f32
    %124 = vector.broadcast %cst_42 : f32 to vector<8x16xf32>
    %c0_43 = arith.constant 0 : index
    %c0_44 = arith.constant 0 : index
    %c0_45 = arith.constant 0 : index
    %125 = vector.load %arg2[%c0_43, %c0_44, %c0_45] : memref<7x8x3xbf16, #tpu.memory_space<vmem>>, vector<1x8x3xbf16>
    %126 = vector.shape_cast %125 : vector<1x8x3xbf16> to vector<8x3xbf16>
    %cst_46 = arith.constant dense<0.000000e+00> : vector<8x16xf32>
    %127 = tpu.matmul %126, %49, %cst_46 {dimension_numbers = #tpu.dot_dimension_numbers<[1], [0], [0], [1], [0, 0, 1, 1], [], []>} : vector<8x3xbf16>, vector<3x16xbf16>, vector<8x16xf32> -> vector<8x16xf32>
    %128 = arith.addf %124, %127 : vector<8x16xf32>
    %c1_47 = arith.constant 1 : index
    %c0_48 = arith.constant 0 : index
    %c0_49 = arith.constant 0 : index
    %129 = vector.load %arg2[%c1_47, %c0_48, %c0_49] : memref<7x8x3xbf16, #tpu.memory_space<vmem>>, vector<1x8x3xbf16>
    %130 = vector.shape_cast %129 : vector<1x8x3xbf16> to vector<8x3xbf16>
    %cst_50 = arith.constant dense<0.000000e+00> : vector<8x16xf32>
    %131 = tpu.matmul %130, %65, %cst_50 {dimension_numbers = #tpu.dot_dimension_numbers<[1], [0], [0], [1], [0, 0, 1, 1], [], []>} : vector<8x3xbf16>, vector<3x16xbf16>, vector<8x16xf32> -> vector<8x16xf32>
    %132 = arith.addf %128, %131 : vector<8x16xf32>
    %c2_51 = arith.constant 2 : index
    %c0_52 = arith.constant 0 : index
    %c0_53 = arith.constant 0 : index
    %133 = vector.load %arg2[%c2_51, %c0_52, %c0_53] : memref<7x8x3xbf16, #tpu.memory_space<vmem>>, vector<1x8x3xbf16>
    %134 = vector.shape_cast %133 : vector<1x8x3xbf16> to vector<8x3xbf16>
    %cst_54 = arith.constant dense<0.000000e+00> : vector<8x16xf32>
    %135 = tpu.matmul %134, %81, %cst_54 {dimension_numbers = #tpu.dot_dimension_numbers<[1], [0], [0], [1], [0, 0, 1, 1], [], []>} : vector<8x3xbf16>, vector<3x16xbf16>, vector<8x16xf32> -> vector<8x16xf32>
    %136 = arith.addf %132, %135 : vector<8x16xf32>
    %c3_55 = arith.constant 3 : index
    %c0_56 = arith.constant 0 : index
    %c0_57 = arith.constant 0 : index
    %137 = vector.load %arg2[%c3_55, %c0_56, %c0_57] : memref<7x8x3xbf16, #tpu.memory_space<vmem>>, vector<1x8x3xbf16>
    %138 = vector.shape_cast %137 : vector<1x8x3xbf16> to vector<8x3xbf16>
    %cst_58 = arith.constant dense<0.000000e+00> : vector<8x16xf32>
    %139 = tpu.matmul %138, %97, %cst_58 {dimension_numbers = #tpu.dot_dimension_numbers<[1], [0], [0], [1], [0, 0, 1, 1], [], []>} : vector<8x3xbf16>, vector<3x16xbf16>, vector<8x16xf32> -> vector<8x16xf32>
    %140 = arith.addf %136, %139 : vector<8x16xf32>
    %c4_59 = arith.constant 4 : index
    %c0_60 = arith.constant 0 : index
    %c0_61 = arith.constant 0 : index
    %141 = vector.load %arg2[%c4_59, %c0_60, %c0_61] : memref<7x8x3xbf16, #tpu.memory_space<vmem>>, vector<1x8x3xbf16>
    %142 = vector.shape_cast %141 : vector<1x8x3xbf16> to vector<8x3xbf16>
    %cst_62 = arith.constant dense<0.000000e+00> : vector<8x16xf32>
    %143 = tpu.matmul %142, %113, %cst_62 {dimension_numbers = #tpu.dot_dimension_numbers<[1], [0], [0], [1], [0, 0, 1, 1], [], []>} : vector<8x3xbf16>, vector<3x16xbf16>, vector<8x16xf32> -> vector<8x16xf32>
    %144 = arith.addf %140, %143 : vector<8x16xf32>
    %145 = tpu.iota {dimensions = array<i32: 0>} : vector<64x16xi32>
    %146 = tpu.iota {dimensions = array<i32: 1>} : vector<64x16xi32>
    %c4_i32_63 = arith.constant 4 : i32
    %147 = vector.broadcast %c4_i32_63 : i32 to vector<64x16xi32>
    %148 = arith.muli %147, %146 : vector<64x16xi32>
    %c4_i32_64 = arith.constant 4 : i32
    %149 = vector.broadcast %c4_i32_64 : i32 to vector<64x16xi32>
    %150 = arith.addi %148, %149 : vector<64x16xi32>
    %151 = arith.cmpi eq, %145, %150 : vector<64x16xi32>
    %152 = arith.extui %151 : vector<64x16xi1> to vector<64x16xi32>
    %153 = arith.sitofp %152 : vector<64x16xi32> to vector<64x16xf32>
    %154 = arith.truncf %153 : vector<64x16xf32> to vector<64x16xbf16>
    %cst_65 = arith.constant dense<0.000000e+00> : vector<3x16xf32>
    %155 = tpu.matmul %2, %154, %cst_65 {dimension_numbers = #tpu.dot_dimension_numbers<[1], [0], [0], [1], [0, 0, 1, 1], [], []>} : vector<3x64xbf16>, vector<64x16xbf16>, vector<3x16xf32> -> vector<3x16xf32>
    %156 = arith.truncf %155 : vector<3x16xf32> to vector<3x16xbf16>
    %c5_66 = arith.constant 5 : index
    %c0_67 = arith.constant 0 : index
    %c0_68 = arith.constant 0 : index
    %157 = vector.load %arg2[%c5_66, %c0_67, %c0_68] : memref<7x8x3xbf16, #tpu.memory_space<vmem>>, vector<1x8x3xbf16>
    %158 = vector.shape_cast %157 : vector<1x8x3xbf16> to vector<8x3xbf16>
    %cst_69 = arith.constant dense<0.000000e+00> : vector<8x16xf32>
    %159 = tpu.matmul %158, %156, %cst_69 {dimension_numbers = #tpu.dot_dimension_numbers<[1], [0], [0], [1], [0, 0, 1, 1], [], []>} : vector<8x3xbf16>, vector<3x16xbf16>, vector<8x16xf32> -> vector<8x16xf32>
    %160 = arith.addf %144, %159 : vector<8x16xf32>
    %161 = tpu.iota {dimensions = array<i32: 0>} : vector<64x16xi32>
    %162 = tpu.iota {dimensions = array<i32: 1>} : vector<64x16xi32>
    %c4_i32_70 = arith.constant 4 : i32
    %163 = vector.broadcast %c4_i32_70 : i32 to vector<64x16xi32>
    %164 = arith.muli %163, %162 : vector<64x16xi32>
    %c5_i32 = arith.constant 5 : i32
    %165 = vector.broadcast %c5_i32 : i32 to vector<64x16xi32>
    %166 = arith.addi %164, %165 : vector<64x16xi32>
    %167 = arith.cmpi eq, %161, %166 : vector<64x16xi32>
    %168 = arith.extui %167 : vector<64x16xi1> to vector<64x16xi32>
    %169 = arith.sitofp %168 : vector<64x16xi32> to vector<64x16xf32>
    %170 = arith.truncf %169 : vector<64x16xf32> to vector<64x16xbf16>
    %cst_71 = arith.constant dense<0.000000e+00> : vector<3x16xf32>
    %171 = tpu.matmul %2, %170, %cst_71 {dimension_numbers = #tpu.dot_dimension_numbers<[1], [0], [0], [1], [0, 0, 1, 1], [], []>} : vector<3x64xbf16>, vector<64x16xbf16>, vector<3x16xf32> -> vector<3x16xf32>
    %172 = arith.truncf %171 : vector<3x16xf32> to vector<3x16xbf16>
    %c6_72 = arith.constant 6 : index
    %c0_73 = arith.constant 0 : index
    %c0_74 = arith.constant 0 : index
    %173 = vector.load %arg2[%c6_72, %c0_73, %c0_74] : memref<7x8x3xbf16, #tpu.memory_space<vmem>>, vector<1x8x3xbf16>
    %174 = vector.shape_cast %173 : vector<1x8x3xbf16> to vector<8x3xbf16>
    %cst_75 = arith.constant dense<0.000000e+00> : vector<8x16xf32>
    %175 = tpu.matmul %174, %172, %cst_75 {dimension_numbers = #tpu.dot_dimension_numbers<[1], [0], [0], [1], [0, 0, 1, 1], [], []>} : vector<8x3xbf16>, vector<3x16xbf16>, vector<8x16xf32> -> vector<8x16xf32>
    %176 = arith.addf %160, %175 : vector<8x16xf32>
    %177 = vector.broadcast %3 : vector<8x1xf32> to vector<8x16xf32>
    %178 = arith.mulf %176, %177 : vector<8x16xf32>
    %179 = vector.broadcast %4 : vector<8x1xf32> to vector<8x16xf32>
    %180 = arith.addf %178, %179 : vector<8x16xf32>
    %cst_76 = arith.constant 0.000000e+00 : f32
    %181 = vector.broadcast %cst_76 : f32 to vector<8x16xf32>
    %182 = arith.maximumf %180, %181 : vector<8x16xf32>
    %183 = arith.maximumf %123, %182 : vector<8x16xf32>
    %184 = arith.truncf %183 : vector<8x16xf32> to vector<8x16xbf16>
    %cst_77 = arith.constant 0.000000e+00 : f32
    %185 = vector.broadcast %cst_77 : f32 to vector<8x16xf32>
    %186 = tpu.iota {dimensions = array<i32: 0>} : vector<16x16xi32>
    %187 = tpu.iota {dimensions = array<i32: 1>} : vector<16x16xi32>
    %c1_i32_78 = arith.constant 1 : i32
    %188 = vector.broadcast %c1_i32_78 : i32 to vector<16x16xi32>
    %189 = arith.muli %188, %187 : vector<16x16xi32>
    %c-1_i32_79 = arith.constant -1 : i32
    %190 = vector.broadcast %c-1_i32_79 : i32 to vector<16x16xi32>
    %191 = arith.addi %189, %190 : vector<16x16xi32>
    %192 = arith.cmpi eq, %186, %191 : vector<16x16xi32>
    %193 = arith.extui %192 : vector<16x16xi1> to vector<16x16xi32>
    %194 = arith.sitofp %193 : vector<16x16xi32> to vector<16x16xf32>
    %195 = arith.truncf %194 : vector<16x16xf32> to vector<16x16xbf16>
    %cst_80 = arith.constant dense<0.000000e+00> : vector<8x16xf32>
    %196 = tpu.matmul %184, %195, %cst_80 {dimension_numbers = #tpu.dot_dimension_numbers<[1], [0], [0], [1], [0, 0, 1, 1], [], []>} : vector<8x16xbf16>, vector<16x16xbf16>, vector<8x16xf32> -> vector<8x16xf32>
    %197 = arith.truncf %196 : vector<8x16xf32> to vector<8x16xbf16>
    %c0_81 = arith.constant 0 : index
    %c0_82 = arith.constant 0 : index
    %c0_83 = arith.constant 0 : index
    %198 = vector.load %arg5[%c0_81, %c0_82, %c0_83] : memref<3x8x8xbf16, #tpu.memory_space<vmem>>, vector<1x8x8xbf16>
    %199 = vector.shape_cast %198 : vector<1x8x8xbf16> to vector<8x8xbf16>
    %cst_84 = arith.constant dense<0.000000e+00> : vector<8x16xf32>
    %200 = tpu.matmul %199, %197, %cst_84 {dimension_numbers = #tpu.dot_dimension_numbers<[1], [0], [0], [1], [0, 0, 1, 1], [], []>} : vector<8x8xbf16>, vector<8x16xbf16>, vector<8x16xf32> -> vector<8x16xf32>
    %201 = arith.addf %185, %200 : vector<8x16xf32>
    %c1_85 = arith.constant 1 : index
    %c0_86 = arith.constant 0 : index
    %c0_87 = arith.constant 0 : index
    %202 = vector.load %arg5[%c1_85, %c0_86, %c0_87] : memref<3x8x8xbf16, #tpu.memory_space<vmem>>, vector<1x8x8xbf16>
    %203 = vector.shape_cast %202 : vector<1x8x8xbf16> to vector<8x8xbf16>
    %cst_88 = arith.constant dense<0.000000e+00> : vector<8x16xf32>
    %204 = tpu.matmul %203, %184, %cst_88 {dimension_numbers = #tpu.dot_dimension_numbers<[1], [0], [0], [1], [0, 0, 1, 1], [], []>} : vector<8x8xbf16>, vector<8x16xbf16>, vector<8x16xf32> -> vector<8x16xf32>
    %205 = arith.addf %201, %204 : vector<8x16xf32>
    %206 = tpu.iota {dimensions = array<i32: 0>} : vector<16x16xi32>
    %207 = tpu.iota {dimensions = array<i32: 1>} : vector<16x16xi32>
    %c1_i32_89 = arith.constant 1 : i32
    %208 = vector.broadcast %c1_i32_89 : i32 to vector<16x16xi32>
    %209 = arith.muli %208, %207 : vector<16x16xi32>
    %c1_i32_90 = arith.constant 1 : i32
    %210 = vector.broadcast %c1_i32_90 : i32 to vector<16x16xi32>
    %211 = arith.addi %209, %210 : vector<16x16xi32>
    %212 = arith.cmpi eq, %206, %211 : vector<16x16xi32>
    %213 = arith.extui %212 : vector<16x16xi1> to vector<16x16xi32>
    %214 = arith.sitofp %213 : vector<16x16xi32> to vector<16x16xf32>
    %215 = arith.truncf %214 : vector<16x16xf32> to vector<16x16xbf16>
    %cst_91 = arith.constant dense<0.000000e+00> : vector<8x16xf32>
    %216 = tpu.matmul %184, %215, %cst_91 {dimension_numbers = #tpu.dot_dimension_numbers<[1], [0], [0], [1], [0, 0, 1, 1], [], []>} : vector<8x16xbf16>, vector<16x16xbf16>, vector<8x16xf32> -> vector<8x16xf32>
    %217 = arith.truncf %216 : vector<8x16xf32> to vector<8x16xbf16>
    %c2_92 = arith.constant 2 : index
    %c0_93 = arith.constant 0 : index
    %c0_94 = arith.constant 0 : index
    %218 = vector.load %arg5[%c2_92, %c0_93, %c0_94] : memref<3x8x8xbf16, #tpu.memory_space<vmem>>, vector<1x8x8xbf16>
    %219 = vector.shape_cast %218 : vector<1x8x8xbf16> to vector<8x8xbf16>
    %cst_95 = arith.constant dense<0.000000e+00> : vector<8x16xf32>
    %220 = tpu.matmul %219, %217, %cst_95 {dimension_numbers = #tpu.dot_dimension_numbers<[1], [0], [0], [1], [0, 0, 1, 1], [], []>} : vector<8x8xbf16>, vector<8x16xbf16>, vector<8x16xf32> -> vector<8x16xf32>
    %221 = arith.addf %205, %220 : vector<8x16xf32>
    %c0_96 = arith.constant 0 : index
    %c0_97 = arith.constant 0 : index
    %222 = vector.load %arg6[%c0_96, %c0_97] : memref<8x1xf32, #tpu.memory_space<vmem>>, vector<8x1xf32>
    %223 = vector.broadcast %222 : vector<8x1xf32> to vector<8x16xf32>
    %224 = arith.mulf %221, %223 : vector<8x16xf32>
    %c0_98 = arith.constant 0 : index
    %c0_99 = arith.constant 0 : index
    %225 = vector.load %arg7[%c0_98, %c0_99] : memref<8x1xf32, #tpu.memory_space<vmem>>, vector<8x1xf32>
    %226 = vector.broadcast %225 : vector<8x1xf32> to vector<8x16xf32>
    %227 = arith.addf %224, %226 : vector<8x16xf32>
    %cst_100 = arith.constant 0.000000e+00 : f32
    %228 = vector.broadcast %cst_100 : f32 to vector<8x16xf32>
    %229 = arith.maximumf %227, %228 : vector<8x16xf32>
    %230 = arith.truncf %229 : vector<8x16xf32> to vector<8x16xbf16>
    %cst_101 = arith.constant 0.000000e+00 : f32
    %231 = vector.broadcast %cst_101 : f32 to vector<8x16xf32>
    %cst_102 = arith.constant dense<0.000000e+00> : vector<8x16xf32>
    %232 = tpu.matmul %230, %195, %cst_102 {dimension_numbers = #tpu.dot_dimension_numbers<[1], [0], [0], [1], [0, 0, 1, 1], [], []>} : vector<8x16xbf16>, vector<16x16xbf16>, vector<8x16xf32> -> vector<8x16xf32>
    %233 = arith.truncf %232 : vector<8x16xf32> to vector<8x16xbf16>
    %c0_103 = arith.constant 0 : index
    %c0_104 = arith.constant 0 : index
    %c0_105 = arith.constant 0 : index
    %234 = vector.load %arg8[%c0_103, %c0_104, %c0_105] : memref<3x8x8xbf16, #tpu.memory_space<vmem>>, vector<1x8x8xbf16>
    %235 = vector.shape_cast %234 : vector<1x8x8xbf16> to vector<8x8xbf16>
    %cst_106 = arith.constant dense<0.000000e+00> : vector<8x16xf32>
    %236 = tpu.matmul %235, %233, %cst_106 {dimension_numbers = #tpu.dot_dimension_numbers<[1], [0], [0], [1], [0, 0, 1, 1], [], []>} : vector<8x8xbf16>, vector<8x16xbf16>, vector<8x16xf32> -> vector<8x16xf32>
    %237 = arith.addf %231, %236 : vector<8x16xf32>
    %c1_107 = arith.constant 1 : index
    %c0_108 = arith.constant 0 : index
    %c0_109 = arith.constant 0 : index
    %238 = vector.load %arg8[%c1_107, %c0_108, %c0_109] : memref<3x8x8xbf16, #tpu.memory_space<vmem>>, vector<1x8x8xbf16>
    %239 = vector.shape_cast %238 : vector<1x8x8xbf16> to vector<8x8xbf16>
    %cst_110 = arith.constant dense<0.000000e+00> : vector<8x16xf32>
    %240 = tpu.matmul %239, %230, %cst_110 {dimension_numbers = #tpu.dot_dimension_numbers<[1], [0], [0], [1], [0, 0, 1, 1], [], []>} : vector<8x8xbf16>, vector<8x16xbf16>, vector<8x16xf32> -> vector<8x16xf32>
    %241 = arith.addf %237, %240 : vector<8x16xf32>
    %cst_111 = arith.constant dense<0.000000e+00> : vector<8x16xf32>
    %242 = tpu.matmul %230, %215, %cst_111 {dimension_numbers = #tpu.dot_dimension_numbers<[1], [0], [0], [1], [0, 0, 1, 1], [], []>} : vector<8x16xbf16>, vector<16x16xbf16>, vector<8x16xf32> -> vector<8x16xf32>
    %243 = arith.truncf %242 : vector<8x16xf32> to vector<8x16xbf16>
    %c2_112 = arith.constant 2 : index
    %c0_113 = arith.constant 0 : index
    %c0_114 = arith.constant 0 : index
    %244 = vector.load %arg8[%c2_112, %c0_113, %c0_114] : memref<3x8x8xbf16, #tpu.memory_space<vmem>>, vector<1x8x8xbf16>
    %245 = vector.shape_cast %244 : vector<1x8x8xbf16> to vector<8x8xbf16>
    %cst_115 = arith.constant dense<0.000000e+00> : vector<8x16xf32>
    %246 = tpu.matmul %245, %243, %cst_115 {dimension_numbers = #tpu.dot_dimension_numbers<[1], [0], [0], [1], [0, 0, 1, 1], [], []>} : vector<8x8xbf16>, vector<8x16xbf16>, vector<8x16xf32> -> vector<8x16xf32>
    %247 = arith.addf %241, %246 : vector<8x16xf32>
    %c0_116 = arith.constant 0 : index
    %c0_117 = arith.constant 0 : index
    %248 = vector.load %arg9[%c0_116, %c0_117] : memref<8x1xf32, #tpu.memory_space<vmem>>, vector<8x1xf32>
    %249 = vector.broadcast %248 : vector<8x1xf32> to vector<8x16xf32>
    %250 = arith.mulf %247, %249 : vector<8x16xf32>
    %c0_118 = arith.constant 0 : index
    %c0_119 = arith.constant 0 : index
    %251 = vector.load %arg10[%c0_118, %c0_119] : memref<8x1xf32, #tpu.memory_space<vmem>>, vector<8x1xf32>
    %252 = vector.broadcast %251 : vector<8x1xf32> to vector<8x16xf32>
    %253 = arith.addf %250, %252 : vector<8x16xf32>
    %254 = arith.addf %253, %183 : vector<8x16xf32>
    %cst_120 = arith.constant 0.000000e+00 : f32
    %255 = vector.broadcast %cst_120 : f32 to vector<8x16xf32>
    %256 = arith.maximumf %254, %255 : vector<8x16xf32>
    %257 = arith.truncf %256 : vector<8x16xf32> to vector<8x16xbf16>
    %cst_121 = arith.constant 0.000000e+00 : f32
    %258 = vector.broadcast %cst_121 : f32 to vector<8x16xf32>
    %cst_122 = arith.constant dense<0.000000e+00> : vector<8x16xf32>
    %259 = tpu.matmul %257, %195, %cst_122 {dimension_numbers = #tpu.dot_dimension_numbers<[1], [0], [0], [1], [0, 0, 1, 1], [], []>} : vector<8x16xbf16>, vector<16x16xbf16>, vector<8x16xf32> -> vector<8x16xf32>
    %260 = arith.truncf %259 : vector<8x16xf32> to vector<8x16xbf16>
    %c0_123 = arith.constant 0 : index
    %c0_124 = arith.constant 0 : index
    %c0_125 = arith.constant 0 : index
    %261 = vector.load %arg11[%c0_123, %c0_124, %c0_125] : memref<3x8x8xbf16, #tpu.memory_space<vmem>>, vector<1x8x8xbf16>
    %262 = vector.shape_cast %261 : vector<1x8x8xbf16> to vector<8x8xbf16>
    %cst_126 = arith.constant dense<0.000000e+00> : vector<8x16xf32>
    %263 = tpu.matmul %262, %260, %cst_126 {dimension_numbers = #tpu.dot_dimension_numbers<[1], [0], [0], [1], [0, 0, 1, 1], [], []>} : vector<8x8xbf16>, vector<8x16xbf16>, vector<8x16xf32> -> vector<8x16xf32>
    %264 = arith.addf %258, %263 : vector<8x16xf32>
    %c1_127 = arith.constant 1 : index
    %c0_128 = arith.constant 0 : index
    %c0_129 = arith.constant 0 : index
    %265 = vector.load %arg11[%c1_127, %c0_128, %c0_129] : memref<3x8x8xbf16, #tpu.memory_space<vmem>>, vector<1x8x8xbf16>
    %266 = vector.shape_cast %265 : vector<1x8x8xbf16> to vector<8x8xbf16>
    %cst_130 = arith.constant dense<0.000000e+00> : vector<8x16xf32>
    %267 = tpu.matmul %266, %257, %cst_130 {dimension_numbers = #tpu.dot_dimension_numbers<[1], [0], [0], [1], [0, 0, 1, 1], [], []>} : vector<8x8xbf16>, vector<8x16xbf16>, vector<8x16xf32> -> vector<8x16xf32>
    %268 = arith.addf %264, %267 : vector<8x16xf32>
    %cst_131 = arith.constant dense<0.000000e+00> : vector<8x16xf32>
    %269 = tpu.matmul %257, %215, %cst_131 {dimension_numbers = #tpu.dot_dimension_numbers<[1], [0], [0], [1], [0, 0, 1, 1], [], []>} : vector<8x16xbf16>, vector<16x16xbf16>, vector<8x16xf32> -> vector<8x16xf32>
    %270 = arith.truncf %269 : vector<8x16xf32> to vector<8x16xbf16>
    %c2_132 = arith.constant 2 : index
    %c0_133 = arith.constant 0 : index
    %c0_134 = arith.constant 0 : index
    %271 = vector.load %arg11[%c2_132, %c0_133, %c0_134] : memref<3x8x8xbf16, #tpu.memory_space<vmem>>, vector<1x8x8xbf16>
    %272 = vector.shape_cast %271 : vector<1x8x8xbf16> to vector<8x8xbf16>
    %cst_135 = arith.constant dense<0.000000e+00> : vector<8x16xf32>
    %273 = tpu.matmul %272, %270, %cst_135 {dimension_numbers = #tpu.dot_dimension_numbers<[1], [0], [0], [1], [0, 0, 1, 1], [], []>} : vector<8x8xbf16>, vector<8x16xbf16>, vector<8x16xf32> -> vector<8x16xf32>
    %274 = arith.addf %268, %273 : vector<8x16xf32>
    %c0_136 = arith.constant 0 : index
    %c0_137 = arith.constant 0 : index
    %275 = vector.load %arg12[%c0_136, %c0_137] : memref<8x1xf32, #tpu.memory_space<vmem>>, vector<8x1xf32>
    %276 = vector.broadcast %275 : vector<8x1xf32> to vector<8x16xf32>
    %277 = arith.mulf %274, %276 : vector<8x16xf32>
    %c0_138 = arith.constant 0 : index
    %c0_139 = arith.constant 0 : index
    %278 = vector.load %arg13[%c0_138, %c0_139] : memref<8x1xf32, #tpu.memory_space<vmem>>, vector<8x1xf32>
    %279 = vector.broadcast %278 : vector<8x1xf32> to vector<8x16xf32>
    %280 = arith.addf %277, %279 : vector<8x16xf32>
    %cst_140 = arith.constant 0.000000e+00 : f32
    %281 = vector.broadcast %cst_140 : f32 to vector<8x16xf32>
    %282 = arith.maximumf %280, %281 : vector<8x16xf32>
    %283 = arith.truncf %282 : vector<8x16xf32> to vector<8x16xbf16>
    %cst_141 = arith.constant 0.000000e+00 : f32
    %284 = vector.broadcast %cst_141 : f32 to vector<8x16xf32>
    %cst_142 = arith.constant dense<0.000000e+00> : vector<8x16xf32>
    %285 = tpu.matmul %283, %195, %cst_142 {dimension_numbers = #tpu.dot_dimension_numbers<[1], [0], [0], [1], [0, 0, 1, 1], [], []>} : vector<8x16xbf16>, vector<16x16xbf16>, vector<8x16xf32> -> vector<8x16xf32>
    %286 = arith.truncf %285 : vector<8x16xf32> to vector<8x16xbf16>
    %c0_143 = arith.constant 0 : index
    %c0_144 = arith.constant 0 : index
    %c0_145 = arith.constant 0 : index
    %287 = vector.load %arg14[%c0_143, %c0_144, %c0_145] : memref<3x8x8xbf16, #tpu.memory_space<vmem>>, vector<1x8x8xbf16>
    %288 = vector.shape_cast %287 : vector<1x8x8xbf16> to vector<8x8xbf16>
    %cst_146 = arith.constant dense<0.000000e+00> : vector<8x16xf32>
    %289 = tpu.matmul %288, %286, %cst_146 {dimension_numbers = #tpu.dot_dimension_numbers<[1], [0], [0], [1], [0, 0, 1, 1], [], []>} : vector<8x8xbf16>, vector<8x16xbf16>, vector<8x16xf32> -> vector<8x16xf32>
    %290 = arith.addf %284, %289 : vector<8x16xf32>
    %c1_147 = arith.constant 1 : index
    %c0_148 = arith.constant 0 : index
    %c0_149 = arith.constant 0 : index
    %291 = vector.load %arg14[%c1_147, %c0_148, %c0_149] : memref<3x8x8xbf16, #tpu.memory_space<vmem>>, vector<1x8x8xbf16>
    %292 = vector.shape_cast %291 : vector<1x8x8xbf16> to vector<8x8xbf16>
    %cst_150 = arith.constant dense<0.000000e+00> : vector<8x16xf32>
    %293 = tpu.matmul %292, %283, %cst_150 {dimension_numbers = #tpu.dot_dimension_numbers<[1], [0], [0], [1], [0, 0, 1, 1], [], []>} : vector<8x8xbf16>, vector<8x16xbf16>, vector<8x16xf32> -> vector<8x16xf32>
    %294 = arith.addf %290, %293 : vector<8x16xf32>
    %cst_151 = arith.constant dense<0.000000e+00> : vector<8x16xf32>
    %295 = tpu.matmul %283, %215, %cst_151 {dimension_numbers = #tpu.dot_dimension_numbers<[1], [0], [0], [1], [0, 0, 1, 1], [], []>} : vector<8x16xbf16>, vector<16x16xbf16>, vector<8x16xf32> -> vector<8x16xf32>
    %296 = arith.truncf %295 : vector<8x16xf32> to vector<8x16xbf16>
    %c2_152 = arith.constant 2 : index
    %c0_153 = arith.constant 0 : index
    %c0_154 = arith.constant 0 : index
    %297 = vector.load %arg14[%c2_152, %c0_153, %c0_154] : memref<3x8x8xbf16, #tpu.memory_space<vmem>>, vector<1x8x8xbf16>
    %298 = vector.shape_cast %297 : vector<1x8x8xbf16> to vector<8x8xbf16>
    %cst_155 = arith.constant dense<0.000000e+00> : vector<8x16xf32>
    %299 = tpu.matmul %298, %296, %cst_155 {dimension_numbers = #tpu.dot_dimension_numbers<[1], [0], [0], [1], [0, 0, 1, 1], [], []>} : vector<8x8xbf16>, vector<8x16xbf16>, vector<8x16xf32> -> vector<8x16xf32>
    %300 = arith.addf %294, %299 : vector<8x16xf32>
    %c0_156 = arith.constant 0 : index
    %c0_157 = arith.constant 0 : index
    %301 = vector.load %arg15[%c0_156, %c0_157] : memref<8x1xf32, #tpu.memory_space<vmem>>, vector<8x1xf32>
    %302 = vector.broadcast %301 : vector<8x1xf32> to vector<8x16xf32>
    %303 = arith.mulf %300, %302 : vector<8x16xf32>
    %c0_158 = arith.constant 0 : index
    %c0_159 = arith.constant 0 : index
    %304 = vector.load %arg16[%c0_158, %c0_159] : memref<8x1xf32, #tpu.memory_space<vmem>>, vector<8x1xf32>
    %305 = vector.broadcast %304 : vector<8x1xf32> to vector<8x16xf32>
    %306 = arith.addf %303, %305 : vector<8x16xf32>
    %307 = arith.addf %306, %256 : vector<8x16xf32>
    %cst_160 = arith.constant 0.000000e+00 : f32
    %308 = vector.broadcast %cst_160 : f32 to vector<8x16xf32>
    %309 = arith.maximumf %307, %308 : vector<8x16xf32>
    %310 = arith.truncf %309 : vector<8x16xf32> to vector<8x16xbf16>
    %cst_161 = arith.constant 0.000000e+00 : f32
    %311 = vector.broadcast %cst_161 : f32 to vector<16x8xf32>
    %312 = tpu.iota {dimensions = array<i32: 0>} : vector<16x8xi32>
    %313 = tpu.iota {dimensions = array<i32: 1>} : vector<16x8xi32>
    %c2_i32_162 = arith.constant 2 : i32
    %314 = vector.broadcast %c2_i32_162 : i32 to vector<16x8xi32>
    %315 = arith.muli %314, %313 : vector<16x8xi32>
    %c-1_i32_163 = arith.constant -1 : i32
    %316 = vector.broadcast %c-1_i32_163 : i32 to vector<16x8xi32>
    %317 = arith.addi %315, %316 : vector<16x8xi32>
    %318 = arith.cmpi eq, %312, %317 : vector<16x8xi32>
    %319 = arith.extui %318 : vector<16x8xi1> to vector<16x8xi32>
    %320 = arith.sitofp %319 : vector<16x8xi32> to vector<16x8xf32>
    %321 = arith.truncf %320 : vector<16x8xf32> to vector<16x8xbf16>
    %cst_164 = arith.constant dense<0.000000e+00> : vector<8x8xf32>
    %322 = tpu.matmul %310, %321, %cst_164 {dimension_numbers = #tpu.dot_dimension_numbers<[1], [0], [0], [1], [0, 0, 1, 1], [], []>} : vector<8x16xbf16>, vector<16x8xbf16>, vector<8x8xf32> -> vector<8x8xf32>
    %323 = arith.truncf %322 : vector<8x8xf32> to vector<8x8xbf16>
    %c0_165 = arith.constant 0 : index
    %c0_166 = arith.constant 0 : index
    %c0_167 = arith.constant 0 : index
    %324 = vector.load %arg17[%c0_165, %c0_166, %c0_167] : memref<3x16x8xbf16, #tpu.memory_space<vmem>>, vector<1x16x8xbf16>
    %325 = vector.shape_cast %324 : vector<1x16x8xbf16> to vector<16x8xbf16>
    %cst_168 = arith.constant dense<0.000000e+00> : vector<16x8xf32>
    %326 = tpu.matmul %325, %323, %cst_168 {dimension_numbers = #tpu.dot_dimension_numbers<[1], [0], [0], [1], [0, 0, 1, 1], [], []>} : vector<16x8xbf16>, vector<8x8xbf16>, vector<16x8xf32> -> vector<16x8xf32>
    %327 = arith.addf %311, %326 : vector<16x8xf32>
    %328 = tpu.iota {dimensions = array<i32: 0>} : vector<16x8xi32>
    %329 = tpu.iota {dimensions = array<i32: 1>} : vector<16x8xi32>
    %c2_i32_169 = arith.constant 2 : i32
    %330 = vector.broadcast %c2_i32_169 : i32 to vector<16x8xi32>
    %331 = arith.muli %330, %329 : vector<16x8xi32>
    %c0_i32_170 = arith.constant 0 : i32
    %332 = vector.broadcast %c0_i32_170 : i32 to vector<16x8xi32>
    %333 = arith.addi %331, %332 : vector<16x8xi32>
    %334 = arith.cmpi eq, %328, %333 : vector<16x8xi32>
    %335 = arith.extui %334 : vector<16x8xi1> to vector<16x8xi32>
    %336 = arith.sitofp %335 : vector<16x8xi32> to vector<16x8xf32>
    %337 = arith.truncf %336 : vector<16x8xf32> to vector<16x8xbf16>
    %cst_171 = arith.constant dense<0.000000e+00> : vector<8x8xf32>
    %338 = tpu.matmul %310, %337, %cst_171 {dimension_numbers = #tpu.dot_dimension_numbers<[1], [0], [0], [1], [0, 0, 1, 1], [], []>} : vector<8x16xbf16>, vector<16x8xbf16>, vector<8x8xf32> -> vector<8x8xf32>
    %339 = arith.truncf %338 : vector<8x8xf32> to vector<8x8xbf16>
    %c1_172 = arith.constant 1 : index
    %c0_173 = arith.constant 0 : index
    %c0_174 = arith.constant 0 : index
    %340 = vector.load %arg17[%c1_172, %c0_173, %c0_174] : memref<3x16x8xbf16, #tpu.memory_space<vmem>>, vector<1x16x8xbf16>
    %341 = vector.shape_cast %340 : vector<1x16x8xbf16> to vector<16x8xbf16>
    %cst_175 = arith.constant dense<0.000000e+00> : vector<16x8xf32>
    %342 = tpu.matmul %341, %339, %cst_175 {dimension_numbers = #tpu.dot_dimension_numbers<[1], [0], [0], [1], [0, 0, 1, 1], [], []>} : vector<16x8xbf16>, vector<8x8xbf16>, vector<16x8xf32> -> vector<16x8xf32>
    %343 = arith.addf %327, %342 : vector<16x8xf32>
    %344 = tpu.iota {dimensions = array<i32: 0>} : vector<16x8xi32>
    %345 = tpu.iota {dimensions = array<i32: 1>} : vector<16x8xi32>
    %c2_i32_176 = arith.constant 2 : i32
    %346 = vector.broadcast %c2_i32_176 : i32 to vector<16x8xi32>
    %347 = arith.muli %346, %345 : vector<16x8xi32>
    %c1_i32_177 = arith.constant 1 : i32
    %348 = vector.broadcast %c1_i32_177 : i32 to vector<16x8xi32>
    %349 = arith.addi %347, %348 : vector<16x8xi32>
    %350 = arith.cmpi eq, %344, %349 : vector<16x8xi32>
    %351 = arith.extui %350 : vector<16x8xi1> to vector<16x8xi32>
    %352 = arith.sitofp %351 : vector<16x8xi32> to vector<16x8xf32>
    %353 = arith.truncf %352 : vector<16x8xf32> to vector<16x8xbf16>
    %cst_178 = arith.constant dense<0.000000e+00> : vector<8x8xf32>
    %354 = tpu.matmul %310, %353, %cst_178 {dimension_numbers = #tpu.dot_dimension_numbers<[1], [0], [0], [1], [0, 0, 1, 1], [], []>} : vector<8x16xbf16>, vector<16x8xbf16>, vector<8x8xf32> -> vector<8x8xf32>
    %355 = arith.truncf %354 : vector<8x8xf32> to vector<8x8xbf16>
    %c2_179 = arith.constant 2 : index
    %c0_180 = arith.constant 0 : index
    %c0_181 = arith.constant 0 : index
    %356 = vector.load %arg17[%c2_179, %c0_180, %c0_181] : memref<3x16x8xbf16, #tpu.memory_space<vmem>>, vector<1x16x8xbf16>
    %357 = vector.shape_cast %356 : vector<1x16x8xbf16> to vector<16x8xbf16>
    %cst_182 = arith.constant dense<0.000000e+00> : vector<16x8xf32>
    %358 = tpu.matmul %357, %355, %cst_182 {dimension_numbers = #tpu.dot_dimension_numbers<[1], [0], [0], [1], [0, 0, 1, 1], [], []>} : vector<16x8xbf16>, vector<8x8xbf16>, vector<16x8xf32> -> vector<16x8xf32>
    %359 = arith.addf %343, %358 : vector<16x8xf32>
    %c0_183 = arith.constant 0 : index
    %c0_184 = arith.constant 0 : index
    %360 = vector.load %arg18[%c0_183, %c0_184] : memref<16x1xf32, #tpu.memory_space<vmem>>, vector<16x1xf32>
    %361 = vector.broadcast %360 : vector<16x1xf32> to vector<16x8xf32>
    %362 = arith.mulf %359, %361 : vector<16x8xf32>
    %c0_185 = arith.constant 0 : index
    %c0_186 = arith.constant 0 : index
    %363 = vector.load %arg19[%c0_185, %c0_186] : memref<16x1xf32, #tpu.memory_space<vmem>>, vector<16x1xf32>
    %364 = vector.broadcast %363 : vector<16x1xf32> to vector<16x8xf32>
    %365 = arith.addf %362, %364 : vector<16x8xf32>
    %cst_187 = arith.constant 0.000000e+00 : f32
    %366 = vector.broadcast %cst_187 : f32 to vector<16x8xf32>
    %367 = arith.maximumf %365, %366 : vector<16x8xf32>
    %368 = arith.truncf %367 : vector<16x8xf32> to vector<16x8xbf16>
    %cst_188 = arith.constant 0.000000e+00 : f32
    %369 = vector.broadcast %cst_188 : f32 to vector<16x8xf32>
    %370 = tpu.iota {dimensions = array<i32: 0>} : vector<8x8xi32>
    %371 = tpu.iota {dimensions = array<i32: 1>} : vector<8x8xi32>
    %c1_i32_189 = arith.constant 1 : i32
    %372 = vector.broadcast %c1_i32_189 : i32 to vector<8x8xi32>
    %373 = arith.muli %372, %371 : vector<8x8xi32>
    %c-1_i32_190 = arith.constant -1 : i32
    %374 = vector.broadcast %c-1_i32_190 : i32 to vector<8x8xi32>
    %375 = arith.addi %373, %374 : vector<8x8xi32>
    %376 = arith.cmpi eq, %370, %375 : vector<8x8xi32>
    %377 = arith.extui %376 : vector<8x8xi1> to vector<8x8xi32>
    %378 = arith.sitofp %377 : vector<8x8xi32> to vector<8x8xf32>
    %379 = arith.truncf %378 : vector<8x8xf32> to vector<8x8xbf16>
    %cst_191 = arith.constant dense<0.000000e+00> : vector<16x8xf32>
    %380 = tpu.matmul %368, %379, %cst_191 {dimension_numbers = #tpu.dot_dimension_numbers<[1], [0], [0], [1], [0, 0, 1, 1], [], []>} : vector<16x8xbf16>, vector<8x8xbf16>, vector<16x8xf32> -> vector<16x8xf32>
    %381 = arith.truncf %380 : vector<16x8xf32> to vector<16x8xbf16>
    %c0_192 = arith.constant 0 : index
    %c0_193 = arith.constant 0 : index
    %c0_194 = arith.constant 0 : index
    %382 = vector.load %arg20[%c0_192, %c0_193, %c0_194] : memref<3x16x16xbf16, #tpu.memory_space<vmem>>, vector<1x16x16xbf16>
    %383 = vector.shape_cast %382 : vector<1x16x16xbf16> to vector<16x16xbf16>
    %cst_195 = arith.constant dense<0.000000e+00> : vector<16x8xf32>
    %384 = tpu.matmul %383, %381, %cst_195 {dimension_numbers = #tpu.dot_dimension_numbers<[1], [0], [0], [1], [0, 0, 1, 1], [], []>} : vector<16x16xbf16>, vector<16x8xbf16>, vector<16x8xf32> -> vector<16x8xf32>
    %385 = arith.addf %369, %384 : vector<16x8xf32>
    %c1_196 = arith.constant 1 : index
    %c0_197 = arith.constant 0 : index
    %c0_198 = arith.constant 0 : index
    %386 = vector.load %arg20[%c1_196, %c0_197, %c0_198] : memref<3x16x16xbf16, #tpu.memory_space<vmem>>, vector<1x16x16xbf16>
    %387 = vector.shape_cast %386 : vector<1x16x16xbf16> to vector<16x16xbf16>
    %cst_199 = arith.constant dense<0.000000e+00> : vector<16x8xf32>
    %388 = tpu.matmul %387, %368, %cst_199 {dimension_numbers = #tpu.dot_dimension_numbers<[1], [0], [0], [1], [0, 0, 1, 1], [], []>} : vector<16x16xbf16>, vector<16x8xbf16>, vector<16x8xf32> -> vector<16x8xf32>
    %389 = arith.addf %385, %388 : vector<16x8xf32>
    %390 = tpu.iota {dimensions = array<i32: 0>} : vector<8x8xi32>
    %391 = tpu.iota {dimensions = array<i32: 1>} : vector<8x8xi32>
    %c1_i32_200 = arith.constant 1 : i32
    %392 = vector.broadcast %c1_i32_200 : i32 to vector<8x8xi32>
    %393 = arith.muli %392, %391 : vector<8x8xi32>
    %c1_i32_201 = arith.constant 1 : i32
    %394 = vector.broadcast %c1_i32_201 : i32 to vector<8x8xi32>
    %395 = arith.addi %393, %394 : vector<8x8xi32>
    %396 = arith.cmpi eq, %390, %395 : vector<8x8xi32>
    %397 = arith.extui %396 : vector<8x8xi1> to vector<8x8xi32>
    %398 = arith.sitofp %397 : vector<8x8xi32> to vector<8x8xf32>
    %399 = arith.truncf %398 : vector<8x8xf32> to vector<8x8xbf16>
    %cst_202 = arith.constant dense<0.000000e+00> : vector<16x8xf32>
    %400 = tpu.matmul %368, %399, %cst_202 {dimension_numbers = #tpu.dot_dimension_numbers<[1], [0], [0], [1], [0, 0, 1, 1], [], []>} : vector<16x8xbf16>, vector<8x8xbf16>, vector<16x8xf32> -> vector<16x8xf32>
    %401 = arith.truncf %400 : vector<16x8xf32> to vector<16x8xbf16>
    %c2_203 = arith.constant 2 : index
    %c0_204 = arith.constant 0 : index
    %c0_205 = arith.constant 0 : index
    %402 = vector.load %arg20[%c2_203, %c0_204, %c0_205] : memref<3x16x16xbf16, #tpu.memory_space<vmem>>, vector<1x16x16xbf16>
    %403 = vector.shape_cast %402 : vector<1x16x16xbf16> to vector<16x16xbf16>
    %cst_206 = arith.constant dense<0.000000e+00> : vector<16x8xf32>
    %404 = tpu.matmul %403, %401, %cst_206 {dimension_numbers = #tpu.dot_dimension_numbers<[1], [0], [0], [1], [0, 0, 1, 1], [], []>} : vector<16x16xbf16>, vector<16x8xbf16>, vector<16x8xf32> -> vector<16x8xf32>
    %405 = arith.addf %389, %404 : vector<16x8xf32>
    %c0_207 = arith.constant 0 : index
    %c0_208 = arith.constant 0 : index
    %406 = vector.load %arg21[%c0_207, %c0_208] : memref<16x1xf32, #tpu.memory_space<vmem>>, vector<16x1xf32>
    %407 = vector.broadcast %406 : vector<16x1xf32> to vector<16x8xf32>
    %408 = arith.mulf %405, %407 : vector<16x8xf32>
    %c0_209 = arith.constant 0 : index
    %c0_210 = arith.constant 0 : index
    %409 = vector.load %arg22[%c0_209, %c0_210] : memref<16x1xf32, #tpu.memory_space<vmem>>, vector<16x1xf32>
    %410 = vector.broadcast %409 : vector<16x1xf32> to vector<16x8xf32>
    %411 = arith.addf %408, %410 : vector<16x8xf32>
    %c0_211 = arith.constant 0 : index
    %c0_212 = arith.constant 0 : index
    %412 = vector.load %arg23[%c0_211, %c0_212] : memref<16x8xbf16, #tpu.memory_space<vmem>>, vector<16x8xbf16>
    %cst_213 = arith.constant dense<0.000000e+00> : vector<16x8xf32>
    %413 = tpu.matmul %412, %339, %cst_213 {dimension_numbers = #tpu.dot_dimension_numbers<[1], [0], [0], [1], [0, 0, 1, 1], [], []>} : vector<16x8xbf16>, vector<8x8xbf16>, vector<16x8xf32> -> vector<16x8xf32>
    %c0_214 = arith.constant 0 : index
    %c0_215 = arith.constant 0 : index
    %414 = vector.load %arg24[%c0_214, %c0_215] : memref<16x1xf32, #tpu.memory_space<vmem>>, vector<16x1xf32>
    %415 = vector.broadcast %414 : vector<16x1xf32> to vector<16x8xf32>
    %416 = arith.mulf %413, %415 : vector<16x8xf32>
    %c0_216 = arith.constant 0 : index
    %c0_217 = arith.constant 0 : index
    %417 = vector.load %arg25[%c0_216, %c0_217] : memref<16x1xf32, #tpu.memory_space<vmem>>, vector<16x1xf32>
    %418 = vector.broadcast %417 : vector<16x1xf32> to vector<16x8xf32>
    %419 = arith.addf %416, %418 : vector<16x8xf32>
    %420 = arith.addf %411, %419 : vector<16x8xf32>
    %cst_218 = arith.constant 0.000000e+00 : f32
    %421 = vector.broadcast %cst_218 : f32 to vector<16x8xf32>
    %422 = arith.maximumf %420, %421 : vector<16x8xf32>
    %cst_219 = arith.constant dense<0.000000e+00> : vector<16xf32>
    %423 = vector.multi_reduction <add>, %422, %cst_219 [1] : vector<16x8xf32> to vector<16xf32>
    %424 = vector.shape_cast %423 : vector<16xf32> to vector<16x1xf32>
    %cst_220 = arith.constant 8.000000e+00 : f32
    %425 = vector.broadcast %cst_220 : f32 to vector<16x1xf32>
    %426 = arith.divf %424, %425 : vector<16x1xf32>
    %c0_221 = arith.constant 0 : index
    %c0_222 = arith.constant 0 : index
    %c0_223 = arith.constant 0 : index
    %427 = vector.load %arg26[%c0_221, %c0_222, %c0_223] : memref<1x16x1xf32, #tpu.memory_space<vmem>>, vector<1x16x1xf32>
    %428 = vector.shape_cast %427 : vector<1x16x1xf32> to vector<16x1xf32>
    %429 = vector.shape_cast %426 : vector<16x1xf32> to vector<1x16x1xf32>
    tpu.vector_store %arg26[%c0_221, %c0_222, %c0_223], %429 {strides = array<i32>} : memref<1x16x1xf32, #tpu.memory_space<vmem>>, vector<1x16x1xf32>,
    return
  }
  func.func @transform_0(%arg0: i32) -> (i32, i32, i32) {
    %c0_i32 = arith.constant 0 : i32
    %c0_i32_0 = arith.constant 0 : i32
    %c0_i32_1 = arith.constant 0 : i32
    return %arg0, %c0_i32, %c0_i32_0 : i32, i32, i32
  }
  func.func @transform_1(%arg0: i32) -> (i32, i32, i32) {
    %c0_i32 = arith.constant 0 : i32
    %c0_i32_0 = arith.constant 0 : i32
    %c0_i32_1 = arith.constant 0 : i32
    %c0_i32_2 = arith.constant 0 : i32
    return %c0_i32, %c0_i32_0, %c0_i32_1 : i32, i32, i32
  }
  func.func @transform_2(%arg0: i32) -> (i32, i32) {
    %c0_i32 = arith.constant 0 : i32
    %c0_i32_0 = arith.constant 0 : i32
    %c0_i32_1 = arith.constant 0 : i32
    return %c0_i32, %c0_i32_0 : i32, i32
  }
  func.func @transform_3(%arg0: i32) -> (i32, i32) {
    %c0_i32 = arith.constant 0 : i32
    %c0_i32_0 = arith.constant 0 : i32
    %c0_i32_1 = arith.constant 0 : i32
    return %c0_i32, %c0_i32_0 : i32, i32
  }
  func.func @transform_4(%arg0: i32) -> (i32, i32, i32) {
    %c0_i32 = arith.constant 0 : i32
    %c0_i32_0 = arith.constant 0 : i32
    %c0_i32_1 = arith.constant 0 : i32
    %c0_i32_2 = arith.constant 0 : i32
    return %c0_i32, %c0_i32_0, %c0_i32_1 : i32, i32, i32
  }
  func.func @transform_5(%arg0: i32) -> (i32, i32) {
    %c0_i32 = arith.constant 0 : i32
    %c0_i32_0 = arith.constant 0 : i32
    %c0_i32_1 = arith.constant 0 : i32
    return %c0_i32, %c0_i32_0 : i32, i32
  }
  func.func @transform_6(%arg0: i32) -> (i32, i32) {
    %c0_i32 = arith.constant 0 : i32
    %c0_i32_0 = arith.constant 0 : i32
    %c0_i32_1 = arith.constant 0 : i32
    return %c0_i32, %c0_i32_0 : i32, i32
  }
  func.func @transform_7(%arg0: i32) -> (i32, i32, i32) {
    %c0_i32 = arith.constant 0 : i32
    %c0_i32_0 = arith.constant 0 : i32
    %c0_i32_1 = arith.constant 0 : i32
    %c0_i32_2 = arith.constant 0 : i32
    return %c0_i32, %c0_i32_0, %c0_i32_1 : i32, i32, i32
  }
  func.func @transform_8(%arg0: i32) -> (i32, i32) {
    %c0_i32 = arith.constant 0 : i32
    %c0_i32_0 = arith.constant 0 : i32
    %c0_i32_1 = arith.constant 0 : i32
    return %c0_i32, %c0_i32_0 : i32, i32
  }
  func.func @transform_9(%arg0: i32) -> (i32, i32) {
    %c0_i32 = arith.constant 0 : i32
    %c0_i32_0 = arith.constant 0 : i32
    %c0_i32_1 = arith.constant 0 : i32
    return %c0_i32, %c0_i32_0 : i32, i32
  }
  func.func @transform_10(%arg0: i32) -> (i32, i32, i32) {
    %c0_i32 = arith.constant 0 : i32
    %c0_i32_0 = arith.constant 0 : i32
    %c0_i32_1 = arith.constant 0 : i32
    %c0_i32_2 = arith.constant 0 : i32
    return %c0_i32, %c0_i32_0, %c0_i32_1 : i32, i32, i32
  }
  func.func @transform_11(%arg0: i32) -> (i32, i32) {
    %c0_i32 = arith.constant 0 : i32
    %c0_i32_0 = arith.constant 0 : i32
    %c0_i32_1 = arith.constant 0 : i32
    return %c0_i32, %c0_i32_0 : i32, i32
  }
  func.func @transform_12(%arg0: i32) -> (i32, i32) {
    %c0_i32 = arith.constant 0 : i32
    %c0_i32_0 = arith.constant 0 : i32
    %c0_i32_1 = arith.constant 0 : i32
    return %c0_i32, %c0_i32_0 : i32, i32
  }
  func.func @transform_13(%arg0: i32) -> (i32, i32, i32) {
    %c0_i32 = arith.constant 0 : i32
    %c0_i32_0 = arith.constant 0 : i32
    %c0_i32_1 = arith.constant 0 : i32
    %c0_i32_2 = arith.constant 0 : i32
    return %c0_i32, %c0_i32_0, %c0_i32_1 : i32, i32, i32
  }
  func.func @transform_14(%arg0: i32) -> (i32, i32) {
    %c0_i32 = arith.constant 0 : i32
    %c0_i32_0 = arith.constant 0 : i32
    %c0_i32_1 = arith.constant 0 : i32
    return %c0_i32, %c0_i32_0 : i32, i32
  }
  func.func @transform_15(%arg0: i32) -> (i32, i32) {
    %c0_i32 = arith.constant 0 : i32
    %c0_i32_0 = arith.constant 0 : i32
    %c0_i32_1 = arith.constant 0 : i32
    return %c0_i32, %c0_i32_0 : i32, i32
  }
  func.func @transform_16(%arg0: i32) -> (i32, i32, i32) {
    %c0_i32 = arith.constant 0 : i32
    %c0_i32_0 = arith.constant 0 : i32
    %c0_i32_1 = arith.constant 0 : i32
    %c0_i32_2 = arith.constant 0 : i32
    return %c0_i32, %c0_i32_0, %c0_i32_1 : i32, i32, i32
  }
  func.func @transform_17(%arg0: i32) -> (i32, i32) {
    %c0_i32 = arith.constant 0 : i32
    %c0_i32_0 = arith.constant 0 : i32
    %c0_i32_1 = arith.constant 0 : i32
    return %c0_i32, %c0_i32_0 : i32, i32
  }
  func.func @transform_18(%arg0: i32) -> (i32, i32) {
    %c0_i32 = arith.constant 0 : i32
    %c0_i32_0 = arith.constant 0 : i32
    %c0_i32_1 = arith.constant 0 : i32
    return %c0_i32, %c0_i32_0 : i32, i32
  }
  func.func @transform_19(%arg0: i32) -> (i32, i32, i32) {
    %c0_i32 = arith.constant 0 : i32
    %c0_i32_0 = arith.constant 0 : i32
    %c0_i32_1 = arith.constant 0 : i32
    %c0_i32_2 = arith.constant 0 : i32
    return %c0_i32, %c0_i32_0, %c0_i32_1 : i32, i32, i32
  }
  func.func @transform_20(%arg0: i32) -> (i32, i32) {
    %c0_i32 = arith.constant 0 : i32
    %c0_i32_0 = arith.constant 0 : i32
    %c0_i32_1 = arith.constant 0 : i32
    return %c0_i32, %c0_i32_0 : i32, i32
  }
  func.func @transform_21(%arg0: i32) -> (i32, i32) {
    %c0_i32 = arith.constant 0 : i32
    %c0_i32_0 = arith.constant 0 : i32
    %c0_i32_1 = arith.constant 0 : i32
    return %c0_i32, %c0_i32_0 : i32, i32
  }
  func.func @transform_22(%arg0: i32) -> (i32, i32) {
    %c0_i32 = arith.constant 0 : i32
    %c0_i32_0 = arith.constant 0 : i32
    %c0_i32_1 = arith.constant 0 : i32
    return %c0_i32, %c0_i32_0 : i32, i32
  }
  func.func @transform_23(%arg0: i32) -> (i32, i32) {
    %c0_i32 = arith.constant 0 : i32
    %c0_i32_0 = arith.constant 0 : i32
    %c0_i32_1 = arith.constant 0 : i32
    return %c0_i32, %c0_i32_0 : i32, i32
  }
  func.func @transform_24(%arg0: i32) -> (i32, i32) {
    %c0_i32 = arith.constant 0 : i32
    %c0_i32_0 = arith.constant 0 : i32
    %c0_i32_1 = arith.constant 0 : i32
    return %c0_i32, %c0_i32_0 : i32, i32
  }
  func.func @transform_25(%arg0: i32) -> (i32, i32, i32) {
    %c0_i32 = arith.constant 0 : i32
    %c0_i32_0 = arith.constant 0 : i32
    %c0_i32_1 = arith.constant 0 : i32
    return %arg0, %c0_i32, %c0_i32_0 : i32, i32, i32
  }
}

</mosaic_0001>

<bundles_post_ra>
// kernel: net_forward.1
= control target key start
LH: loop header
LB: loop body
LE: loop exit
PB: predicated region body
PF: predicated region fallthrough
CT: control target
= control target key end

     0   :  { %s4797_s29 = smov 0   ;;  %s5538_s0 = inlined_call_operand.vmem [shape: f32[2,3,64], index: 0, kind: input, shape index: {}]   ;;  %s5539_s1 = inlined_call_operand.vmem [shape: bf16[7,8,3], index: 1, kind: input, shape index: {}]   ;;  %s5540_s2 = inlined_call_operand.vmem [shape: f32[8,1], index: 2, kind: input, shape index: {}]   ;;  %s5541_s3 = inlined_call_operand.vmem [shape: f32[8,1], index: 3, kind: input, shape index: {}]   ;;  %s5542_s4 = inlined_call_operand.vmem [shape: bf16[3,8,8], index: 4, kind: input, shape index: {}]   ;;  %s5543_s5 = inlined_call_operand.vmem [shape: f32[8,1], index: 5, kind: input, shape index: {}]   ;;  %s5544_s6 = inlined_call_operand.vmem [shape: f32[8,1], index: 6, kind: input, shape index: {}]   ;;  %s5545_s7 = inlined_call_operand.vmem [shape: bf16[3,8,8], index: 7, kind: input, shape index: {}]   ;;  %s5546_s8 = inlined_call_operand.vmem [shape: f32[8,1], index: 8, kind: input, shape index: {}]   ;;  %s5547_s9 = inlined_call_operand.vmem [shape: f32[8,1], index: 9, kind: input, shape index: {}]   ;;  %s5548_s10 = inlined_call_operand.vmem [shape: bf16[3,8,8], index: 10, kind: input, shape index: {}]   ;;  %s5549_s11 = inlined_call_operand.vmem [shape: f32[8,1], index: 11, kind: input, shape index: {}]   ;;  %s5550_s12 = inlined_call_operand.vmem [shape: f32[8,1], index: 12, kind: input, shape index: {}]   ;;  %s5551_s13 = inlined_call_operand.vmem [shape: bf16[3,8,8], index: 13, kind: input, shape index: {}]   ;;  %s5552_s14 = inlined_call_operand.vmem [shape: f32[8,1], index: 14, kind: input, shape index: {}]   ;;  %s5553_s15 = inlined_call_operand.vmem [shape: f32[8,1], index: 15, kind: input, shape index: {}]   ;;  %s5554_s16 = inlined_call_operand.vmem [shape: bf16[3,16,8], index: 16, kind: input, shape index: {}]   ;;  %s5555_s17 = inlined_call_operand.vmem [shape: f32[16,1], index: 17, kind: input, shape index: {}]   ;;  %s5556_s18 = inlined_call_operand.vmem [shape: f32[16,1], index: 18, kind: input, shape index: {}]   ;;  %s5557_s19 = inlined_call_operand.vmem [shape: bf16[3,16,16], index: 19, kind: input, shape index: {}]   ;;  %s5558_s20 = inlined_call_operand.vmem [shape: f32[16,1], index: 20, kind: input, shape index: {}]   ;;  %s5559_s21 = inlined_call_operand.vmem [shape: f32[16,1], index: 21, kind: input, shape index: {}]   ;;  %s5560_s22 = inlined_call_operand.vmem [shape: bf16[16,8], index: 22, kind: input, shape index: {}]   ;;  %s5561_s23 = inlined_call_operand.vmem [shape: f32[16,1], index: 23, kind: input, shape index: {}]   ;;  %s5562_s24 = inlined_call_operand.vmem [shape: f32[16,1], index: 24, kind: input, shape index: {}]   ;;  %s5563_s25 = inlined_call_operand.vmem [shape: f32[2,16,1], index: 25, kind: output, shape index: {}]  }
   0x1   :  { %5567 = sst [smem:[#allocation2_spill]] %s5538_s0 }
   0x2   :  { %5568 = sst [smem:[#allocation3_spill]] %s5539_s1 }
   0x3   :  { %5569 = sst [smem:[#allocation4_spill]] %s5540_s2 }
   0x4   :  { %5570 = sst [smem:[#allocation5_spill]] %s5541_s3 }
   0x5   :  { %5571 = sst [smem:[#allocation6_spill]] %s5542_s4 }
   0x6   :  { %5572 = sst [smem:[#allocation7_spill]] %s5543_s5 }
   0x7   :  { %5573 = sst [smem:[#allocation8_spill]] %s5544_s6 }
   0x8   :  { %5574 = sst [smem:[#allocation9_spill]] %s5545_s7 }
   0x9   :  { %5575 = sst [smem:[#allocation10_spill]] %s5546_s8 }
   0xa   :  { %5576 = sst [smem:[#allocation11_spill]] %s5547_s9 }
   0xb   :  { %5577 = sst [smem:[#allocation12_spill]] %s5549_s11 }
   0xc   :  { %5578 = sst [smem:[#allocation13_spill]] %s5552_s14 }
   0xd LB: > { %s3840_s2 = sadd.s32 4294967295, %s4660_s29   ;;  %p3844_p0 = scmp.ge.s32.totalorder %s4660_s29, 1  ;;  %s4660_s29 = sphi %s4797_s29, %s35_s29  }
   0xe   : > { %p686_p1 = scmp.lt.s32.totalorder %s4660_s29, 3 }
  0x10   : > { %p687_p2 = pnand %p3844_p0, %p686_p1 }
  0x11   : > { %p753_p3 = scmp.lt.s32.totalorder (!%p687_p2), %s3840_s2, 1  ;;  %s5579_s3 = sld [smem:[#allocation2_spill]] (!%p687_p2) }
  0x12   : > { %690 = sbr.rel (%p687_p2) target bundleno = 4616 (0x1208), region = 120  ;;  %s5580_s27 = sld [smem:[#allocation3_spill]] (!%p687_p2) }
  0x13   : > { %s5581_s4 = sld [smem:[#allocation4_spill]] (!%p687_p2) }
  0x14   : > { %s5582_s5 = sld [smem:[#allocation5_spill]] (!%p687_p2) }
  0x15   : > { %s5584_s11 = sld [smem:[#allocation12_spill]] (!%p687_p2) }
  0x16   : > { %s5585_s14 = sld [smem:[#allocation13_spill]] (!%p687_p2) }
  0x17   : > { %v767_v0 = vlaneseq  ;;  %v4662_v1 = vmov 0.0   ;;  %vm4663_vm0 = vmmov 0   ;;  %s5596_s2 = smov (!%p753_p3, %s3840_s2), 1  ;;  %v4664_v13 = vmov 1.0|1.0   ;;  %s5591_s30 = sld [smem:[#allocation7_spill]] }
  0x18   : > { %4260 = vmatprep.subr.bf16.mxu1 %v4662_v1  ;;  %4248 = vmatprep.subr.bf16.mxu0 %v4662_v1  ;;  %s3845_s6 = sshll.u32 %s5596_s2, 2  ;;  %v4665_v17 = vmov 65535   ;;  %v4899_v30 = vld [vmem:[%s5580_s27 + $0x4] sm:$0xf]  ;;  %v4905_v33 = vld [vmem:[%s5580_s27] sm:$0xf] }
  0x19   : > { %v4807_v2 = vshrl.u32 %v767_v0, 7  ;;  %v4809_v3 = vand.u32 127, %v767_v0  ;;  %4268 = vmatprep.mubr.msk.bf16.mxu1 %vm4663_vm0, %v4662_v1  ;;  %4256 = vmatprep.mubr.msk.bf16.mxu0 %vm4663_vm0, %v4662_v1  ;;  %s756_s26 = scalar_lea.vmem %s5579_s3, %s3845_s6  ;;  %v4945_v49 = vld [vmem:[%s5580_s27 + $0x8] sm:$0xf]  ;;  %v4986_v62 = vld [vmem:[%s5580_s27 + $0xc] sm:$0xf] }
  0x1a   : > { %v763_v15 = vld [vmem:[%s756_s26] sm:$0x7]  ;;  %s5583_s3 = sld [smem:[#allocation10_spill]]  ;;  %s4110_s9 = sshll.u32 %s5596_s2, 4 }
  0x1b   : > { %v4816_v4 = vadd.s32 48, %v4807_v2  ;;  %v4819_v5 = vadd.s32 56, %v4807_v2  ;;  %v4822_v6 = vmul.u32 4, %v4809_v3  ;;  %v4825_v7 = vadd.s32 32, %v4807_v2  ;;  %s5592_s26 = sld [smem:[#allocation8_spill]] }
  0x1c   : > { %v4828_v8 = vadd.s32 40, %v4807_v2  ;;  %v4835_v11 = vadd.s32 16, %v4807_v2  ;;  %v4838_v12 = vadd.s32 24, %v4807_v2  ;;  %v4855_v14 = vadd.s32 8, %v4807_v2 }
  0x1d   : > { %v854_v9 = vadd.s32 4294967294, %v4822_v6  ;;  %v779_v10 = vadd.s32 4294967293, %v4822_v6  ;;  %v4875_v16 = vpack.c.bf16 %v763_v15, %v763_v15  ;;  %v1023_v19 = vadd.s32 4294967295, %v4822_v6 }
  0x1e   : > { %v1260_v56 = vadd.s32 1, %v4822_v6 }
  0x1f   : > { %vm861_vm1 = vcmp.eq.s32.totalorder %v4816_v4, %v854_v9  ;;  %vm862_vm2 = vcmp.eq.s32.totalorder %v4819_v5, %v854_v9  ;;  %vm786_vm3 = vcmp.eq.s32.totalorder %v4816_v4, %v779_v10  ;;  %vm787_vm4 = vcmp.eq.s32.totalorder %v4819_v5, %v779_v10 }
  0x20   : > { %vm3873_vm5 = vmpackc.low %vm862_vm2, %vm861_vm1  ;;  %vm859_vm6 = vcmp.eq.s32.totalorder %v4825_v7, %v854_v9  ;;  %vm860_vm7 = vcmp.eq.s32.totalorder %v4828_v8, %v854_v9  ;;  %vm784_vm8 = vcmp.eq.s32.totalorder %v4825_v7, %v779_v10  ;;  %vm785_vm9 = vcmp.eq.s32.totalorder %v4828_v8, %v779_v10 }
  0x21   : > { %4261 = vmatpush3.bf16.msk.msra.mxu1 %vm3873_vm5, %v4664_v13  ;;  %vm3856_vm10 = vmpackc.low %vm787_vm4, %vm786_vm3  ;;  %vm857_vm13 = vcmp.eq.s32.totalorder %v4835_v11, %v854_v9  ;;  %vm858_vm14 = vcmp.eq.s32.totalorder %v4838_v12, %v854_v9  ;;  %vm782_vm15 = vcmp.eq.s32.totalorder %v4835_v11, %v779_v10  ;;  %vm783_vm1 = vcmp.eq.s32.totalorder %v4838_v12, %v779_v10 }
  0x22   : > { %4249 = vmatpush3.bf16.msk.msra.mxu0 %vm3856_vm10, %v4664_v13  ;;  %4262 = vmatprep.subr.bf16.mxu1 %v4662_v1  ;;  %vm3875_vm11 = vmpackc.low %vm860_vm7, %vm859_vm6  ;;  %vm855_vm4 = vcmp.eq.s32.totalorder %v4807_v2, %v854_v9  ;;  %vm856_vm5 = vcmp.eq.s32.totalorder %v4855_v14, %v854_v9  ;;  %vm780_vm6 = vcmp.eq.s32.totalorder %v4807_v2, %v779_v10  ;;  %vm808_vm10 = vcmask 523264  }
  0x23   : > { %4250 = vmatprep.subr.bf16.mxu0 %v4662_v1  ;;  %vm3858_vm12 = vmpackc.low %vm785_vm9, %vm784_vm8  ;;  %vm781_vm7 = vcmp.eq.s32.totalorder %v4855_v14, %v779_v10 }
  0x24   : > { %vm3877_vm2 = vmpackc.low %vm858_vm14, %vm857_vm13  ;;  %vm1030_vm13 = vcmp.eq.s32.totalorder %v4816_v4, %v1023_v19  ;;  %vm1031_vm14 = vcmp.eq.s32.totalorder %v4819_v5, %v1023_v19 }
  0x25   : > { %4263 = vmatpush3.bf16.msk.msra.mxu1 %vm3875_vm11, %v4664_v13  ;;  %vm3860_vm3 = vmpackc.low %vm783_vm1, %vm782_vm15  ;;  %vm930_vm11 = vcmask 1040384   ;;  %vm926_vm15 = vcmask 23552  }
  0x26   : > { %4251 = vmatpush3.bf16.msk.msra.mxu0 %vm3858_vm12, %v4664_v13  ;;  %4264 = vmatprep.subr.bf16.mxu1 %v4662_v1  ;;  %vm3879_vm8 = vmpackc.low %vm856_vm5, %vm855_vm4  ;;  %vm931_vm12 = vcmask 1041408   ;;  %v932_v18 = vsel %vm930_vm11, 4294967295, %v4665_v17  ;;  %vm1026_vm5 = vcmp.eq.s32.totalorder %v4835_v11, %v1023_v19 }
  0x27   : > { %4252 = vmatprep.subr.bf16.mxu0 %v4662_v1  ;;  %vm3862_vm9 = vmpackc.low %vm781_vm7, %vm780_vm6  ;;  %v4890_v21 = vsel %vm931_vm12, %v932_v18, 0  ;;  %vm1027_vm6 = vcmp.eq.s32.totalorder %v4838_v12, %v1023_v19  ;;  %vm1148_vm12 = vcmp.eq.s32.totalorder %v4816_v4, %v4822_v6  ;;  %v1379_v18 = vadd.s32 2, %v4822_v6 }
  0x28   : > { %vm3893_vm1 = vmpackc.low %vm1031_vm14, %vm1030_vm13  ;;  %vm1149_vm13 = vcmp.eq.s32.totalorder %v4819_v5, %v4822_v6 }
  0x29   : > { %4265 = vmatpush3.bf16.msk.msra.mxu1 %vm3877_vm2, %v4664_v13  ;;  %vm1028_vm2 = vcmp.eq.s32.totalorder %v4825_v7, %v1023_v19  ;;  %vm3897_vm7 = vmpackc.low %vm1027_vm6, %vm1026_vm5  ;;  %vm1145_vm5 = vcmp.eq.s32.totalorder %v4838_v12, %v4822_v6 }
  0x2a   : > { %4253 = vmatpush3.bf16.msk.msra.mxu0 %vm3860_vm3, %v4664_v13  ;;  %4266 = vmatprep.subr.bf16.mxu1 %v4662_v1  ;;  %vm1029_vm3 = vcmp.eq.s32.totalorder %v4828_v8, %v1023_v19  ;;  %vm3912_vm14 = vmpackc.low %vm1149_vm13, %vm1148_vm12  ;;  %vm1268_vm12 = vcmp.eq.s32.totalorder %v4819_v5, %v1260_v56 }
  0x2b   : > { %4254 = vmatprep.subr.bf16.mxu0 %v4662_v1  ;;  %vm3895_vm4 = vmpackc.low %vm1029_vm3, %vm1028_vm2  ;;  %vm1147_vm2 = vcmp.eq.s32.totalorder %v4828_v8, %v4822_v6 }
  0x2d   : > { %4267 = vmatpush3.bf16.msk.msra.mxu1 %vm3879_vm8, %v4664_v13  ;;  %vm1024_vm8 = vcmp.eq.s32.totalorder %v4807_v2, %v1023_v19 }
  0x2e   : > { %4255 = vmatpush3.bf16.msk.msra.mxu0 %vm3862_vm9, %v4664_v13  ;;  %4278 = vmatprep.subr.bf16.mxu1 %v4662_v1  ;;  %vm1025_vm9 = vcmp.eq.s32.totalorder %v4855_v14, %v1023_v19 }
  0x2f   : > { %4272 = vmatprep.subr.bf16.mxu0 %v4662_v1  ;;  %vm3899_vm11 = vmpackc.low %vm1025_vm9, %vm1024_vm8  ;;  %vm1143_vm8 = vcmp.eq.s32.totalorder %v4855_v14, %v4822_v6 }
  0x30   : > { %4269 = vmatmul.mubr.msk.bf16.vlgmr.msra.gmra.mxu1 %vm808_vm10, %v4875_v16 }
  0x31   : > { %4257 = vmatmul.mubr.msk.bf16.vlgmr.msra.gmra.mxu0 %vm808_vm10, %v4875_v16  ;;  %4280 = vmatprep.mubr.msk.bf16.mxu1 %vm4663_vm0, %v4662_v1 }
  0x32   : > { %4274 = vmatprep.mubr.msk.bf16.mxu0 %vm4663_vm0, %v4662_v1 }
  0xf0   : > { %v917_v20 = vpop.f32.mrf.mxu1 }
  0xf1   : > { %v923_v22 = vpack.c.bf16 %v917_v20, %v917_v20  ;;  %v846_v23 = vpop.f32.mrf.mxu0 }
  0xf2   : > { %v852_v24 = vpack.c.bf16 %v846_v23, %v846_v23  ;;  %v4270_v25 = vpop.f32.mrf.mxu1 }
  0xf3   : > { %v935_v26 = vand.u32 %v4890_v21, %v923_v22  ;;  %v4258_v27 = vpop.f32.mrf.mxu0  ;;  %v5021_v25 = vld [vmem:[%s5580_s27 + $0x10] sm:$0xf] }
  0xf4   : > { %v981_v28 = vand.u32 %v4890_v21, %v852_v24  ;;  %v920_v29 = vpop.f32.mrf.mxu1 }
  0xf5   : > { %4273 = vmatpush3.bf16.msra.mxu0 %v935_v26  ;;  %v849_v31 = vpop.f32.mrf.mxu0 }
  0xf6   : > { %v4271_v32 = vpop.f32.mrf.mxu1  ;;  %4279 = vmatpush3.bf16.msra.mxu1 %v981_v28  ;;  %4284 = vmatprep.subr.bf16.mxu0 %v4662_v1 }
  0xf7   : > { %v4259_v34 = vpop.f32.mrf.mxu0  ;;  %4296 = vmatprep.subr.bf16.mxu1 %v4662_v1 }
  0xf8   : > { %4275 = vmatmul.mubr.msk.bf16.vlgmr.msra.gmra.mxu0 %vm926_vm15, %v4899_v30  ;;  %v1498_v34 = vadd.s32 3, %v4822_v6 }
  0xf9   : > { %4281 = vmatmul.mubr.msk.bf16.vlgmr.msra.gmra.mxu1 %vm926_vm15, %v4905_v33  ;;  %4285 = vmatpush3.bf16.msk.msra.mxu0 %vm3893_vm1, %v4664_v13  ;;  %vm1146_vm1 = vcmp.eq.s32.totalorder %v4825_v7, %v4822_v6 }
  0xfa   : > { %4286 = vmatprep.subr.bf16.mxu0 %v4662_v1  ;;  %4292 = vmatprep.mubr.msk.bf16.mxu0 %vm4663_vm0, %v4662_v1  ;;  %vm3914_vm3 = vmpackc.low %vm1147_vm2, %vm1146_vm1  ;;  %vm1266_vm1 = vcmp.eq.s32.totalorder %v4828_v8, %v1260_v56 }
  0xfb   : > { %4298 = vmatprep.mubr.msk.bf16.mxu1 %vm4663_vm0, %v4662_v1 }
  0xfd   : > { %4287 = vmatpush3.bf16.msk.msra.mxu0 %vm3895_vm4, %v4664_v13  ;;  %vm1144_vm4 = vcmp.eq.s32.totalorder %v4835_v11, %v4822_v6 }
  0xfe   : > { %4288 = vmatprep.subr.bf16.mxu0 %v4662_v1  ;;  %vm3916_vm6 = vmpackc.low %vm1145_vm5, %vm1144_vm4  ;;  %vm1264_vm4 = vcmp.eq.s32.totalorder %v4838_v12, %v1260_v56 }
 0x101   : > { %4289 = vmatpush3.bf16.msk.msra.mxu0 %vm3897_vm7, %v4664_v13  ;;  %vm1142_vm7 = vcmp.eq.s32.totalorder %v4807_v2, %v4822_v6 }
 0x102   : > { %4290 = vmatprep.subr.bf16.mxu0 %v4662_v1  ;;  %vm3918_vm9 = vmpackc.low %vm1143_vm8, %vm1142_vm7  ;;  %vm1262_vm7 = vcmp.eq.s32.totalorder %v4855_v14, %v1260_v56 }
 0x105   : > { %4291 = vmatpush3.bf16.msk.msra.mxu0 %vm3899_vm11, %v4664_v13  ;;  %vm1267_vm11 = vcmp.eq.s32.totalorder %v4816_v4, %v1260_v56 }
 0x106   : > { %4314 = vmatprep.subr.bf16.mxu0 %v4662_v1  ;;  %vm3931_vm13 = vmpackc.low %vm1268_vm12, %vm1267_vm11  ;;  %vm1387_vm11 = vcmp.eq.s32.totalorder %v4819_v5, %v1379_v18 }
 0x108   : > { %4293 = vmatmul.mubr.msk.bf16.vlgmr.msra.gmra.mxu0 %vm808_vm10, %v4875_v16 }
 0x109   : > { %4316 = vmatprep.mubr.msk.bf16.mxu0 %vm4663_vm0, %v4662_v1 }
 0x1b8   : > { %v971_v35 = vpop.f32.mrf.mxu0 }
 0x1b9   : > { %v1017_v36 = vpop.f32.mrf.mxu1 }
 0x1ba   : > { %v1018_v37 = vadd.f32 %v1017_v36, %v971_v35  ;;  %v4276_v38 = vpop.f32.mrf.mxu0 }
 0x1bb   : > { %v4282_v39 = vpop.f32.mrf.mxu1 }
 0x1bc   : > { %v974_v40 = vpop.f32.mrf.mxu0 }
 0x1bd   : > { %v1020_v41 = vpop.f32.mrf.mxu1  ;;  %v5055_v40 = vld [vmem:[%s5580_s27 + $0x14] sm:$0xf] }
 0x1be   : > { %v4277_v42 = vpop.f32.mrf.mxu0 }
 0x1bf   : > { %v4283_v43 = vpop.f32.mrf.mxu1  ;;  %v1833_v42 = vadd.s32 4, %v4822_v6 }
 0x1c0   : > { %v4666_v43 = vmov 0  }
 0x1c1   : > { %4645 = vset.pattern.permute.xlu0 %v4666_v43  ;;  %4646 = vset.pattern.permute.xlu1 %v4666_v43 }
 0x1c8   : > { %v1086_v44 = vpop.f32.mrf.mxu0 }
 0x1c9   : > { %v1092_v45 = vpack.c.bf16 %v1086_v44, %v1086_v44  ;;  %v766_v44 = vld [vmem:[%s5582_s5] sm:$0xff]  ;;  %s5588_s5 = sld [smem:[#allocation6_spill]] }
 0x1ca   : > { %v4294_v46 = vpop.f32.mrf.mxu0 }
 0x1cb   : > { %v4935_v47 = vand.u32 %v1092_v45, %v4890_v21 }
 0x1cc   : > { %v1089_v48 = vpop.f32.mrf.mxu0 }
 0x1cd   : > { %4297 = vmatpush3.bf16.msra.mxu1 %v4935_v47 }
 0x1ce   : > { %v4295_v50 = vpop.f32.mrf.mxu0  ;;  %4302 = vmatprep.subr.bf16.mxu1 %v4662_v1 }
 0x1d0   : > { %4299 = vmatmul.mubr.msk.bf16.vlgmr.msra.gmra.mxu1 %vm926_vm15, %v4945_v49 }
 0x1d1   : > { %4303 = vmatpush3.bf16.msk.msra.mxu1 %vm3912_vm14, %v4664_v13  ;;  %4310 = vmatprep.mubr.msk.bf16.mxu1 %vm4663_vm0, %v4662_v1  ;;  %vm1265_vm14 = vcmp.eq.s32.totalorder %v4825_v7, %v1260_v56 }
 0x1d2   : > { %4304 = vmatprep.subr.bf16.mxu1 %v4662_v1  ;;  %vm3933_vm2 = vmpackc.low %vm1266_vm1, %vm1265_vm14  ;;  %vm1385_vm14 = vcmp.eq.s32.totalorder %v4828_v8, %v1379_v18 }
 0x1d5   : > { %4305 = vmatpush3.bf16.msk.msra.mxu1 %vm3914_vm3, %v4664_v13  ;;  %vm1263_vm3 = vcmp.eq.s32.totalorder %v4835_v11, %v1260_v56 }
 0x1d6   : > { %4306 = vmatprep.subr.bf16.mxu1 %v4662_v1  ;;  %vm3935_vm5 = vmpackc.low %vm1264_vm4, %vm1263_vm3  ;;  %vm1383_vm3 = vcmp.eq.s32.totalorder %v4838_v12, %v1379_v18 }
 0x1d9   : > { %4307 = vmatpush3.bf16.msk.msra.mxu1 %vm3916_vm6, %v4664_v13  ;;  %vm1261_vm6 = vcmp.eq.s32.totalorder %v4807_v2, %v1260_v56  ;;  %v5125_v56 = vld [vmem:[%s5580_s27 + $0x18] sm:$0xf] }
 0x1da   : > { %4308 = vmatprep.subr.bf16.mxu1 %v4662_v1  ;;  %vm3937_vm8 = vmpackc.low %vm1262_vm7, %vm1261_vm6  ;;  %vm1381_vm6 = vcmp.eq.s32.totalorder %v4855_v14, %v1379_v18 }
 0x1dd   : > { %4309 = vmatpush3.bf16.msk.msra.mxu1 %vm3918_vm9, %v4664_v13  ;;  %vm1386_vm9 = vcmp.eq.s32.totalorder %v4816_v4, %v1379_v18 }
 0x1de   : > { %4332 = vmatprep.subr.bf16.mxu1 %v4662_v1  ;;  %vm3950_vm12 = vmpackc.low %vm1387_vm11, %vm1386_vm9  ;;  %vm1506_vm9 = vcmp.eq.s32.totalorder %v4819_v5, %v1498_v34 }
 0x1e0   : > { %4311 = vmatmul.mubr.msk.bf16.vlgmr.msra.gmra.mxu1 %vm808_vm10, %v4875_v16 }
 0x1e1   : > { %4334 = vmatprep.mubr.msk.bf16.mxu1 %vm4663_vm0, %v4662_v1 }
 0x290   : > { %v1135_v51 = vpop.f32.mrf.mxu1 }
 0x291   : > { %v1141_v52 = vadd.f32 %v1135_v51, %v1018_v37 }
 0x292   : > { %v4300_v53 = vpop.f32.mrf.mxu1 }
 0x294   : > { %v1138_v54 = vpop.f32.mrf.mxu1 }
 0x296   : > { %v4301_v55 = vpop.f32.mrf.mxu1 }
 0x2a0   : > { %v1204_v57 = vpop.f32.mrf.mxu1 }
 0x2a1   : > { %v1210_v58 = vpack.c.bf16 %v1204_v57, %v1204_v57 }
 0x2a2   : > { %v4312_v59 = vpop.f32.mrf.mxu1 }
 0x2a3   : > { %v4978_v60 = vand.u32 %v1210_v58, %v4890_v21 }
 0x2a4   : > { %v1207_v61 = vpop.f32.mrf.mxu1 }
 0x2a5   : > { %4315 = vmatpush3.bf16.msra.mxu0 %v4978_v60 }
 0x2a6   : > { %v4313_v63 = vpop.f32.mrf.mxu1  ;;  %4320 = vmatprep.subr.bf16.mxu0 %v4662_v1 }
 0x2a8   : > { %4317 = vmatmul.mubr.msk.bf16.vlgmr.msra.gmra.mxu0 %vm926_vm15, %v4986_v62 }
 0x2a9   : > { %4321 = vmatpush3.bf16.msk.msra.mxu0 %vm3931_vm13, %v4664_v13  ;;  %4328 = vmatprep.mubr.msk.bf16.mxu0 %vm4663_vm0, %v4662_v1  ;;  %vm1384_vm13 = vcmp.eq.s32.totalorder %v4825_v7, %v1379_v18 }
 0x2aa   : > { %4322 = vmatprep.subr.bf16.mxu0 %v4662_v1  ;;  %vm3952_vm1 = vmpackc.low %vm1385_vm14, %vm1384_vm13  ;;  %vm1504_vm13 = vcmp.eq.s32.totalorder %v4828_v8, %v1498_v34 }
 0x2ad   : > { %4323 = vmatpush3.bf16.msk.msra.mxu0 %vm3933_vm2, %v4664_v13  ;;  %vm1382_vm2 = vcmp.eq.s32.totalorder %v4835_v11, %v1379_v18 }
 0x2ae   : > { %4324 = vmatprep.subr.bf16.mxu0 %v4662_v1  ;;  %vm3954_vm4 = vmpackc.low %vm1383_vm3, %vm1382_vm2  ;;  %vm1502_vm2 = vcmp.eq.s32.totalorder %v4838_v12, %v1498_v34 }
 0x2b1   : > { %4325 = vmatpush3.bf16.msk.msra.mxu0 %vm3935_vm5, %v4664_v13  ;;  %vm1380_vm5 = vcmp.eq.s32.totalorder %v4807_v2, %v1379_v18 }
 0x2b2   : > { %4326 = vmatprep.subr.bf16.mxu0 %v4662_v1  ;;  %vm3956_vm7 = vmpackc.low %vm1381_vm6, %vm1380_vm5  ;;  %vm1500_vm5 = vcmp.eq.s32.totalorder %v4855_v14, %v1498_v34 }
 0x2b5   : > { %4327 = vmatpush3.bf16.msk.msra.mxu0 %vm3937_vm8, %v4664_v13  ;;  %vm1505_vm8 = vcmp.eq.s32.totalorder %v4816_v4, %v1498_v34 }
 0x2b6   : > { %4350 = vmatprep.subr.bf16.mxu0 %v4662_v1  ;;  %vm3969_vm11 = vmpackc.low %vm1506_vm9, %vm1505_vm8  ;;  %vm1841_vm8 = vcmp.eq.s32.totalorder %v4819_v5, %v1833_v42 }
 0x2b8   : > { %4329 = vmatmul.mubr.msk.bf16.vlgmr.msra.gmra.mxu0 %vm808_vm10, %v4875_v16 }
 0x2b9   : > { %4352 = vmatprep.mubr.msk.bf16.mxu0 %vm4663_vm0, %v4662_v1 }
 0x368   : > { %v1253_v0 = vpop.f32.mrf.mxu0 }
 0x369   : > { %v1259_v9 = vadd.f32 %v1253_v0, %v1141_v52 }
 0x36a   : > { %v4318_v10 = vpop.f32.mrf.mxu0 }
 0x36c   : > { %v1256_v15 = vpop.f32.mrf.mxu0 }
 0x36e   : > { %v4319_v17 = vpop.f32.mrf.mxu0 }
 0x378   : > { %v1323_v19 = vpop.f32.mrf.mxu0 }
 0x379   : > { %v1329_v20 = vpack.c.bf16 %v1323_v19, %v1323_v19 }
 0x37a   : > { %v4330_v22 = vpop.f32.mrf.mxu0 }
 0x37b   : > { %v5013_v23 = vand.u32 %v1329_v20, %v4890_v21  ;;  %v3755_v20 = vld [vmem:[%s5562_s24] sm:$0xff] }
 0x37c   : > { %v1326_v24 = vpop.f32.mrf.mxu0 }
 0x37d   : > { %4333 = vmatpush3.bf16.msra.mxu1 %v5013_v23 }
 0x37e   : > { %v4331_v26 = vpop.f32.mrf.mxu0  ;;  %4338 = vmatprep.subr.bf16.mxu1 %v4662_v1 }
 0x380   : > { %4335 = vmatmul.mubr.msk.bf16.vlgmr.msra.gmra.mxu1 %vm926_vm15, %v5021_v25 }
 0x381   : > { %4339 = vmatpush3.bf16.msk.msra.mxu1 %vm3950_vm12, %v4664_v13  ;;  %4346 = vmatprep.mubr.msk.bf16.mxu1 %vm4663_vm0, %v4662_v1  ;;  %vm1503_vm12 = vcmp.eq.s32.totalorder %v4825_v7, %v1498_v34 }
 0x382   : > { %4340 = vmatprep.subr.bf16.mxu1 %v4662_v1  ;;  %vm3971_vm14 = vmpackc.low %vm1504_vm13, %vm1503_vm12  ;;  %vm1839_vm12 = vcmp.eq.s32.totalorder %v4828_v8, %v1833_v42 }
 0x385   : > { %4341 = vmatpush3.bf16.msk.msra.mxu1 %vm3952_vm1, %v4664_v13  ;;  %vm1501_vm1 = vcmp.eq.s32.totalorder %v4835_v11, %v1498_v34 }
 0x386   : > { %4342 = vmatprep.subr.bf16.mxu1 %v4662_v1  ;;  %vm3973_vm3 = vmpackc.low %vm1502_vm2, %vm1501_vm1  ;;  %vm1837_vm1 = vcmp.eq.s32.totalorder %v4838_v12, %v1833_v42 }
 0x389   : > { %4343 = vmatpush3.bf16.msk.msra.mxu1 %vm3954_vm4, %v4664_v13  ;;  %vm1499_vm4 = vcmp.eq.s32.totalorder %v4807_v2, %v1498_v34 }
 0x38a   : > { %4344 = vmatprep.subr.bf16.mxu1 %v4662_v1  ;;  %vm3975_vm6 = vmpackc.low %vm1500_vm5, %vm1499_vm4  ;;  %vm1835_vm4 = vcmp.eq.s32.totalorder %v4855_v14, %v1833_v42 }
 0x38d   : > { %4345 = vmatpush3.bf16.msk.msra.mxu1 %vm3956_vm7, %v4664_v13  ;;  %vm1840_vm7 = vcmp.eq.s32.totalorder %v4816_v4, %v1833_v42 }
 0x38e   : > { %4368 = vmatprep.subr.bf16.mxu1 %v4662_v1  ;;  %vm3993_vm9 = vmpackc.low %vm1841_vm8, %vm1840_vm7 }
 0x390   : > { %4347 = vmatmul.mubr.msk.bf16.vlgmr.msra.gmra.mxu1 %vm808_vm10, %v4875_v16 }
 0x391   : > { %4370 = vmatprep.mubr.msk.bf16.mxu1 %vm4663_vm0, %v4662_v1 }
 0x440   : > { %v1372_v27 = vpop.f32.mrf.mxu1 }
 0x441   : > { %v5046_v28 = vadd.f32 %v1372_v27, %v1259_v9 }
 0x442   : > { %v4336_v29 = vpop.f32.mrf.mxu1 }
 0x444   : > { %v1375_v31 = vpop.f32.mrf.mxu1 }
 0x446   : > { %v4337_v32 = vpop.f32.mrf.mxu1 }
 0x450   : > { %v1442_v35 = vpop.f32.mrf.mxu1 }
 0x451   : > { %v1448_v36 = vpack.c.bf16 %v1442_v35, %v1442_v35 }
 0x452   : > { %v4348_v37 = vpop.f32.mrf.mxu1 }
 0x453   : > { %v1455_v38 = vand.u32 %v1448_v36, %v4890_v21 }
 0x454   : > { %v1445_v39 = vpop.f32.mrf.mxu1 }
 0x455   : > { %4351 = vmatpush3.bf16.msra.mxu0 %v1455_v38 }
 0x456   : > { %v4349_v41 = vpop.f32.mrf.mxu1  ;;  %4356 = vmatprep.subr.bf16.mxu0 %v4662_v1 }
 0x458   : > { %4353 = vmatmul.mubr.msk.bf16.vlgmr.msra.gmra.mxu0 %vm926_vm15, %v5055_v40 }
 0x459   : > { %4357 = vmatpush3.bf16.msk.msra.mxu0 %vm3969_vm11, %v4664_v13  ;;  %4364 = vmatprep.mubr.msk.bf16.mxu0 %vm4663_vm0, %v4662_v1  ;;  %vm1838_vm11 = vcmp.eq.s32.totalorder %v4825_v7, %v1833_v42 }
 0x45a   : > { %4358 = vmatprep.subr.bf16.mxu0 %v4662_v1  ;;  %vm3995_vm13 = vmpackc.low %vm1839_vm12, %vm1838_vm11 }
 0x45d   : > { %4359 = vmatpush3.bf16.msk.msra.mxu0 %vm3971_vm14, %v4664_v13  ;;  %vm1836_vm14 = vcmp.eq.s32.totalorder %v4835_v11, %v1833_v42 }
 0x45e   : > { %4360 = vmatprep.subr.bf16.mxu0 %v4662_v1  ;;  %vm3997_vm2 = vmpackc.low %vm1837_vm1, %vm1836_vm14 }
 0x461   : > { %4361 = vmatpush3.bf16.msk.msra.mxu0 %vm3973_vm3, %v4664_v13  ;;  %vm1834_vm3 = vcmp.eq.s32.totalorder %v4807_v2, %v1833_v42 }
 0x462   : > { %4362 = vmatprep.subr.bf16.mxu0 %v4662_v1  ;;  %vm3999_vm5 = vmpackc.low %vm1835_vm4, %vm1834_vm3 }
 0x465   : > { %4363 = vmatpush3.bf16.msk.msra.mxu0 %vm3975_vm6, %v4664_v13 }
 0x466   : > { %4380 = vmatprep.subr.bf16.mxu0 %v4662_v1 }
 0x468   : > { %4365 = vmatmul.mubr.msk.bf16.vlgmr.msra.gmra.mxu0 %vm808_vm10, %v4875_v16 }
 0x469   : > { %4381 = vmatpush3.bf16.msra.mxu0 %v4935_v47  ;;  %4382 = vmatprep.mubr.msk.bf16.mxu0 %vm4663_vm0, %v4662_v1 }
 0x46a   : > { %4392 = vmatprep.subr.bf16.mxu0 %v4662_v1 }
 0x470   : > { %4383 = vmatmul.mubr.msk.bf16.vlgmr.msra.gmra.mxu0 %vm926_vm15, %v4905_v33  ;;  %v765_v33 = vld [vmem:[%s5581_s4] sm:$0xff]  ;;  %s5593_s4 = sld [smem:[#allocation11_spill]] }
 0x471   : > { %4393 = vmatpush3.bf16.msra.mxu0 %v1455_v38  ;;  %4394 = vmatprep.mubr.msk.bf16.mxu0 %vm4663_vm0, %v4662_v1 }
 0x472   : > { %4404 = vmatprep.subr.bf16.mxu0 %v4662_v1  ;;  %1619 = vperm.xlu0 %4645, %v765_v33  }
 0x476   : > { %1625 = vperm.xlu0 %4645, %v766_v44  }
 0x478   : > { %4395 = vmatmul.mubr.msk.bf16.vlgmr.msra.gmra.mxu0 %vm926_vm15, %v4986_v62 }
 0x479   : > { %4405 = vmatpush3.bf16.msk.msra.mxu0 %vm3993_vm9, %v4664_v13  ;;  %4412 = vmatprep.mubr.msk.bf16.mxu0 %vm4663_vm0, %v4662_v1 }
 0x47a   : > { %4406 = vmatprep.subr.bf16.mxu0 %v4662_v1 }
 0x47d   : > { %4407 = vmatpush3.bf16.msk.msra.mxu0 %vm3995_vm13, %v4664_v13 }
 0x47e   : > { %4408 = vmatprep.subr.bf16.mxu0 %v4662_v1 }
 0x481   : > { %4409 = vmatpush3.bf16.msk.msra.mxu0 %vm3997_vm2, %v4664_v13 }
 0x482   : > { %4410 = vmatprep.subr.bf16.mxu0 %v4662_v1 }
 0x485   : > { %4411 = vmatpush3.bf16.msk.msra.mxu0 %vm3999_vm5, %v4664_v13 }
 0x486   : > { %4434 = vmatprep.subr.bf16.mxu0 %v4662_v1 }
 0x488   : > { %4413 = vmatmul.mubr.msk.bf16.vlgmr.msra.gmra.mxu0 %vm808_vm10, %v4875_v16 }
 0x489   : > { %4436 = vmatprep.mubr.msk.bf16.mxu0 %vm4663_vm0, %v4662_v1 }
 0x518   : > { %v1491_v45 = vpop.f32.mrf.mxu0 }
 0x519   : > { %v5119_v46 = vadd.f32 %v1491_v45, %v5046_v28 }
 0x51a   : > { %v4354_v47 = vpop.f32.mrf.mxu0 }
 0x51c   : > { %v1494_v48 = vpop.f32.mrf.mxu0 }
 0x51e   : > { %v4355_v50 = vpop.f32.mrf.mxu0 }
 0x528   : > { %v1561_v51 = vpop.f32.mrf.mxu0 }
 0x529   : > { %v1567_v52 = vpack.c.bf16 %v1561_v51, %v1561_v51 }
 0x52a   : > { %v4366_v53 = vpop.f32.mrf.mxu0 }
 0x52b   : > { %v1574_v54 = vand.u32 %v1567_v52, %v4890_v21 }
 0x52c   : > { %v1564_v55 = vpop.f32.mrf.mxu0 }
 0x52d   : > { %4369 = vmatpush3.bf16.msra.mxu1 %v1574_v54 }
 0x52e   : > { %v4367_v57 = vpop.f32.mrf.mxu0  ;;  %4374 = vmatprep.subr.bf16.mxu1 %v4662_v1 }
 0x52f   : > { %v5217_v57 = vadd.s32 4294967295, %v4809_v3 }
 0x530   : > { %4371 = vmatmul.mubr.msk.bf16.vlgmr.msra.gmra.mxu1 %vm926_vm15, %v5125_v56  ;;  %v5130_v58 = vpop.f32.mrf.mxu0 }
 0x531   : > { %4375 = vmatpush3.bf16.msra.mxu1 %v4978_v60  ;;  %4376 = vmatprep.mubr.msk.bf16.mxu1 %vm4663_vm0, %v4662_v1  ;;  %vm2068_vm5 = vcmp.eq.s32.totalorder %v4855_v14, %v5217_v57 }
 0x532   : > { %v4384_v59 = vpop.f32.mrf.mxu0  ;;  %4386 = vmatprep.subr.bf16.mxu1 %v4662_v1 }
 0x534   : > { %v1707_v61 = vpop.f32.mrf.mxu0 }
 0x536   : > { %v4385_v62 = vpop.f32.mrf.mxu0 }
 0x538   : > { %4377 = vmatmul.mubr.msk.bf16.vlgmr.msra.gmra.mxu1 %vm926_vm15, %v4899_v30  ;;  %v5138_v63 = vpop.f32.mrf.mxu0  ;;  %v1947_v30 = vadd.s32 5, %v4822_v6  ;;  %v3046_v6 = vld [vmem:[%s5585_s14] sm:$0xff] }
 0x539   : > { %4387 = vmatpush3.bf16.msra.mxu1 %v5013_v23  ;;  %4388 = vmatprep.mubr.msk.bf16.mxu1 %vm4663_vm0, %v4662_v1 }
 0x53a   : > { %v4396_v0 = vpop.f32.mrf.mxu0  ;;  %4398 = vmatprep.subr.bf16.mxu1 %v4662_v1  ;;  %vm1954_vm6 = vcmp.eq.s32.totalorder %v4816_v4, %v1947_v30  ;;  %vm1955_vm7 = vcmp.eq.s32.totalorder %v4819_v5, %v1947_v30  ;;  %vm1952_vm9 = vcmp.eq.s32.totalorder %v4825_v7, %v1947_v30  ;;  %vm1953_vm11 = vcmp.eq.s32.totalorder %v4828_v8, %v1947_v30  ;;  %v2557_v4 = vld [vmem:[%s5583_s3] sm:$0xff] }
 0x53b   : > { %vm4011_vm8 = vmpackc.low %vm1955_vm7, %vm1954_vm6  ;;  %vm1950_vm13 = vcmp.eq.s32.totalorder %v4835_v11, %v1947_v30  ;;  %vm1951_vm14 = vcmp.eq.s32.totalorder %v4838_v12, %v1947_v30  ;;  %vm1948_vm2 = vcmp.eq.s32.totalorder %v4807_v2, %v1947_v30  ;;  %vm1949_vm3 = vcmp.eq.s32.totalorder %v4855_v14, %v1947_v30  ;;  %2560 = vperm.xlu0 %4645, %v2557_v4   ;;  %v2802_v5 = vld [vmem:[%s5584_s11] sm:$0xff] }
 0x53c   : > { %v1788_v60 = vpop.f32.mrf.mxu0  ;;  %vm4013_vm12 = vmpackc.low %vm1953_vm11, %vm1952_vm9  ;;  %v3379_v7 = vld [vmem:[%s5555_s17] sm:$0xff]  ;;  %vm2126_vm7 = vcmask 1043456   ;;  %vm2122_vm11 = vcmask 64512  }
 0x53d   : > { %vm4015_vm1 = vmpackc.low %vm1951_vm14, %vm1950_vm13  ;;  %v3393_v8 = vld [vmem:[%s5556_s18] sm:$0xff] }
 0x53e   : > { %v4397_v9 = vpop.f32.mrf.mxu0  ;;  %vm4017_vm4 = vmpackc.low %vm1949_vm3, %vm1948_vm2  ;;  %v3662_v11 = vld [vmem:[%s5558_s20] sm:$0xff] }
 0x53f   : > { %2805 = vperm.xlu0 %4645, %v2802_v5   ;;  %v3741_v12 = vld [vmem:[%s5561_s23] sm:$0xff] }
 0x540   : > { %4389 = vmatmul.mubr.msk.bf16.vlgmr.msra.gmra.mxu1 %vm926_vm15, %v4945_v49  ;;  %v4026_v5 = vld [vmem:[%s5588_s5 + $0x4] sm:$0xf] }
 0x541   : > { %4399 = vmatpush3.bf16.msra.mxu1 %v1574_v54  ;;  %4400 = vmatprep.mubr.msk.bf16.mxu1 %vm4663_vm0, %v4662_v1 }
 0x542   : > { %4416 = vmatprep.subr.bf16.mxu1 %v4662_v1 }
 0x543   : > { %3049 = vperm.xlu0 %4645, %v3046_v6   ;;  %v2862_v6 = vld [vmem:[%s5551_s13] sm:$0xf] }
 0x547   : > { %3383 = vperm.xlu0 %4645, %v3379_v7   ;;  %v2313_v7 = vld [vmem:[%s5591_s30] sm:$0xff]  ;;  %s761_s30 = scalar_lea.vmem %s5563_s25, %s4110_s9 }
 0x548   : > { %v1896_v10 = vpop.f32.mrf.mxu0  ;;  %4401 = vmatmul.mubr.msk.bf16.vlgmr.msra.gmra.mxu1 %vm926_vm15, %v5021_v25  ;;  %2316 = vperm.xlu1 %4646, %v2313_v7  }
 0x549   : > { %v1902_v15 = vpack.c.bf16 %v1896_v10, %v1896_v10  ;;  %4418 = vmatprep.mubr.msk.bf16.mxu1 %vm4663_vm0, %v4662_v1 }
 0x54a   : > { %v4414_v17 = vpop.f32.mrf.mxu0 }
 0x54b   : > { %v1904_v18 = vand.u32 %v1902_v15, %v4890_v21  ;;  %3397 = vperm.xlu0 %4645, %v3393_v8   ;;  %v2320_v8 = vld [vmem:[%s5592_s26] sm:$0xff]  ;;  %s5594_s26 = sld [smem:[#allocation9_spill]] }
 0x54c   : > { %v1899_v49 = vpop.f32.mrf.mxu0  ;;  %2323 = vperm.xlu1 %4646, %v2320_v8  }
 0x54d   : > { %4417 = vmatpush3.bf16.msra.mxu1 %v1904_v18  ;;  %v5235_v18 = vadd.s32 1, %v4809_v3 }
 0x54e   : > { %v4415_v19 = vpop.f32.mrf.mxu0  ;;  %4422 = vmatprep.subr.bf16.mxu1 %v4662_v1 }
 0x54f   : > { %3666 = vperm.xlu0 %4645, %v3662_v11   ;;  %vm2217_vm9 = vcmp.eq.s32.totalorder %v4855_v14, %v5235_v18  ;;  %v2564_v11 = vld [vmem:[%s5593_s4] sm:$0xff] }
 0x550   : > { %4419 = vmatmul.mubr.msk.bf16.vlgmr.msra.gmra.mxu1 %vm926_vm15, %v5055_v40  ;;  %2567 = vperm.xlu1 %4646, %v2564_v11  }
 0x551   : > { %4423 = vmatpush3.bf16.msk.msra.mxu1 %vm4011_vm8, %v4664_v13  ;;  %4430 = vmatprep.mubr.msk.bf16.mxu1 %vm4663_vm0, %v4662_v1  ;;  %vm2216_vm8 = vcmp.eq.s32.totalorder %v4807_v2, %v5235_v18 }
 0x552   : > { %4424 = vmatprep.subr.bf16.mxu1 %v4662_v1 }
 0x553   : > { %3745 = vperm.xlu0 %4645, %v3741_v12   ;;  %v2809_v12 = vld [vmem:[%s5550_s12] sm:$0xff] }
 0x554   : > { %2812 = vperm.xlu1 %4646, %v2809_v12  }
 0x555   : > { %4425 = vmatpush3.bf16.msk.msra.mxu1 %vm4013_vm12, %v4664_v13  ;;  %vm5256_vm12 = vmpackc.low %vm2217_vm9, %vm2216_vm8 }
 0x556   : > { %4426 = vmatprep.subr.bf16.mxu1 %v4662_v1 }
 0x559   : > { %4427 = vmatpush3.bf16.msk.msra.mxu1 %vm4015_vm1, %v4664_v13 }
 0x55a   : > { %4428 = vmatprep.subr.bf16.mxu1 %v4662_v1 }
 0x55d   : > { %4429 = vmatpush3.bf16.msk.msra.mxu1 %vm4017_vm4, %v4664_v13 }
 0x55e   : > { %4446 = vmatprep.subr.bf16.mxu1 %v4662_v1 }
 0x560   : > { %4431 = vmatmul.mubr.msk.bf16.vlgmr.msra.gmra.mxu1 %vm808_vm10, %v4875_v16  ;;  %v3676_v16 = vld [vmem:[%s5559_s21] sm:$0xff]  ;;  %vm2067_vm10 = vcmp.eq.s32.totalorder %v4807_v2, %v5217_v57 }
 0x561   : > { %4448 = vmatprep.mubr.msk.bf16.mxu1 %vm4663_vm0, %v4662_v1  ;;  %3680 = vperm.xlu0 %4645, %v3676_v16   ;;  %vm5226_vm6 = vmpackc.low %vm2068_vm5, %vm2067_vm10  ;;  %v3053_v16 = vld [vmem:[%s5553_s15] sm:$0xff] }
 0x562   : > { %3056 = vperm.xlu1 %4646, %v3053_v16  }
 0x565   : > { %3759 = vperm.xlu0 %4645, %v3755_v20   ;;  %v3380_v20 = vld [vmem:[%s5555_s17 + $0x8] sm:$0xff] }
 0x566   : > { %3388 = vperm.xlu1 %4646, %v3380_v20  }
 0x5f0   : > { %v1610_v22 = vpop.f32.mrf.mxu1 }
 0x5f1   : > { %v1616_v23 = vadd.f32 %v1610_v22, %v5119_v46  ;;  %v3394_v22 = vld [vmem:[%s5556_s18 + $0x8] sm:$0xff] }
 0x5f2   : > { %v4372_v24 = vpop.f32.mrf.mxu1  ;;  %3402 = vperm.xlu1 %4646, %v3394_v22  }
 0x5f3   : > { %v3742_v24 = vld [vmem:[%s5561_s23 + $0x8] sm:$0xff] }
 0x5f4   : > { %v1613_v25 = vpop.f32.mrf.mxu1 }
 0x5f5   : > { %v3677_v25 = vld [vmem:[%s5559_s21 + $0x8] sm:$0xff] }
 0x5f6   : > { %v4373_v26 = vpop.f32.mrf.mxu1 }
 0x5f7   : > { %v3756_v26 = vld [vmem:[%s5562_s24 + $0x8] sm:$0xff] }
 0x5f8   : > { %v1664_v27 = vpop.f32.mrf.mxu1 }
 0x5f9   : > { %v1705_v32 = vadd.f32 %v5130_v58, %v1664_v27 }
 0x5fa   : > { %v4378_v28 = vpop.f32.mrf.mxu1 }
 0x5fc   : > { %v1667_v29 = vpop.f32.mrf.mxu1 }
 0x5fe   : > { %v4379_v31 = vpop.f32.mrf.mxu1 }
 0x600   : > { %v1744_v34 = vpop.f32.mrf.mxu1 }
 0x601   : > { %v1750_v35 = vadd.f32 %v1744_v34, %v1705_v32 }
 0x602   : > { %v4390_v36 = vpop.f32.mrf.mxu1 }
 0x603   : > { %v1791_v39 = vadd.f32 %v5138_v63, %v1750_v35  ;;  %v2119_v35 = vld [vmem:[%s5588_s5] sm:$0xf] }
 0x604   : > { %v1747_v37 = vpop.f32.mrf.mxu1 }
 0x606   : > { %v4391_v38 = vpop.f32.mrf.mxu1 }
 0x608   : > { %v1826_v40 = vpop.f32.mrf.mxu1 }
 0x609   : > { %v1832_v41 = vadd.f32 %v1826_v40, %v1791_v39 }
 0x60a   : > { %v4402_v42 = vpop.f32.mrf.mxu1 }
 0x60c   : > { %v1829_v33 = vpop.f32.mrf.mxu1 }
 0x60e   : > { %v4403_v43 = vpop.f32.mrf.mxu1 }
 0x610   : > { %v1940_v44 = vpop.f32.mrf.mxu1 }
 0x611   : > { %v1946_v45 = vadd.f32 %v1940_v44, %v1832_v41  ;;  %v4034_v44 = vld [vmem:[%s5588_s5 + $0x8] sm:$0xf] }
 0x612   : > { %v4420_v46 = vpop.f32.mrf.mxu1 }
 0x614   : > { %v1943_v47 = vpop.f32.mrf.mxu1 }
 0x616   : > { %v4421_v48 = vpop.f32.mrf.mxu1 }
 0x620   : > { %v2010_v50 = vpop.f32.mrf.mxu1 }
 0x621   : > { %v2016_v51 = vpack.c.bf16 %v2010_v50, %v2010_v50 }
 0x622   : > { %v4432_v52 = vpop.f32.mrf.mxu1 }
 0x623   : > { %v2018_v53 = vand.u32 %v2016_v51, %v4890_v21  ;;  %v2317_v51 = vpop.permute.xlu1 %2316 }
 0x624   : > { %v2013_v54 = vpop.f32.mrf.mxu1 }
 0x625   : > { %4435 = vmatpush3.bf16.msra.mxu0 %v2018_v53 }
 0x626   : > { %v4433_v55 = vpop.f32.mrf.mxu1  ;;  %4440 = vmatprep.subr.bf16.mxu0 %v4662_v1 }
 0x628   : > { %4437 = vmatmul.mubr.msk.bf16.vlgmr.msra.gmra.mxu0 %vm926_vm15, %v5125_v56  ;;  %v1620_v56 = vpop.permute.xlu0 %1619  ;;  %vm2074_vm15 = vcmask 130048  }
 0x629   : > { %4442 = vmatprep.mubr.msk.bf16.mxu0 %vm4663_vm0, %v4662_v1  ;;  %4441 = vmatpush3.bf16.msk.msra.mxu0 %vm5226_vm6, %v4664_v13  ;;  %v1622_v58 = vmul.f32 %v1620_v56, %v1616_v23  ;;  %v3663_v23 = vld [vmem:[%s5558_s20 + $0x8] sm:$0xff] }
 0x62a   : > { %4452 = vmatprep.subr.bf16.mxu0 %v4662_v1  ;;  %3671 = vperm.xlu1 %4646, %v3663_v23  }
 0x62c   : > { %v1626_v59 = vpop.permute.xlu0 %1625 }
 0x62d   : > { %v1628_v0 = vadd.f32 %v1626_v59, %v1622_v58  ;;  %v2324_v58 = vpop.permute.xlu1 %2323 }
 0x62e   : > { %3750 = vperm.xlu1 %4646, %v3742_v24  }
 0x62f   : > { %v1629_v15 = vmax.f32 %v1628_v0, 0.0 }
 0x632   : > { %3685 = vperm.xlu1 %4646, %v3677_v25   ;;  %v4045_v25 = vld [vmem:[%s5594_s26 + $0x8] sm:$0xf] }
 0x636   : > { %3764 = vperm.xlu1 %4646, %v3756_v26  }
 0x6e8   : > { %v2054_v61 = vpop.f32.mrf.mxu0 }
 0x6e9   : > { %v2060_v62 = vadd.f32 %v2054_v61, %v1946_v45 }
 0x6ea   : > { %v4438_v63 = vpop.f32.mrf.mxu0 }
 0x6eb   : > { %v2061_v60 = vmul.f32 %v2060_v62, %v1620_v56 }
 0x6ec   : > { %v2057_v9 = vpop.f32.mrf.mxu0 }
 0x6ed   : > { %v2062_v30 = vadd.f32 %v2061_v60, %v1626_v59  ;;  %v4039_v9 = vld [vmem:[%s5594_s26 + $0x4] sm:$0xf] }
 0x6ee   : > { %v4439_v10 = vpop.f32.mrf.mxu0 }
 0x6ef   : > { %v2063_v17 = vmax.f32 %v2062_v30, 0.0 }
 0x6f1   : > { %v5237_v49 = vmax.f32 %v1629_v15, %v2063_v17 }
 0x6f3   : > { %v2065_v19 = vpack.c.bf16 %v5237_v49, %v5237_v49 }
 0x6f5   : > { %4443 = vmatmul.mubr.msk.bf16.vlgmr.msra.gmra.mxu0 %vm2074_vm15, %v2065_v19  ;;  %v2127_v4 = vsel %vm2126_vm7, %v2065_v19, 0 }
 0x6f6   : > { %4447 = vmatpush3.bf16.msra.mxu1 %v2127_v4  ;;  %4454 = vmatprep.mubr.msk.bf16.mxu0 %vm4663_vm0, %v4662_v1 }
 0x6f7   : > { %4458 = vmatprep.subr.bf16.mxu1 %v4662_v1 }
 0x6f9   : > { %4449 = vmatmul.mubr.msk.bf16.vlgmr.msra.gmra.mxu1 %vm2122_vm11, %v4026_v5  ;;  %v2373_v5 = vld [vmem:[%s5594_s26] sm:$0xf] }
 0x6fa   : > { %4459 = vmatpush3.bf16.msk.msra.mxu1 %vm5256_vm12, %v4664_v13  ;;  %4460 = vmatprep.mubr.msk.bf16.mxu1 %vm4663_vm0, %v4662_v1 }
 0x6fb   : > { %4470 = vmatprep.subr.bf16.mxu1 %v4662_v1 }
 0x701   : > { %4461 = vmatmul.mubr.msk.bf16.vlgmr.msra.gmra.mxu1 %vm2074_vm15, %v2065_v19 }
 0x702   : > { %4471 = vmatpush3.bf16.msk.msra.mxu1 %vm5226_vm6, %v4664_v13  ;;  %4472 = vmatprep.mubr.msk.bf16.mxu1 %vm4663_vm0, %v4662_v1 }
 0x703   : > { %4482 = vmatprep.subr.bf16.mxu1 %v4662_v1 }
 0x7b5   : > { %v2112_v27 = vpop.f32.mrf.mxu0 }
 0x7b6   : > { %v2118_v28 = vpack.c.bf16 %v2112_v27, %v2112_v27 }
 0x7b7   : > { %v4444_v29 = vpop.f32.mrf.mxu0 }
 0x7b8   : > { %v2173_v31 = vsel %vm2126_vm7, %v2118_v28, 0 }
 0x7b9   : > { %v2115_v32 = vpop.f32.mrf.mxu0  ;;  %v2163_v34 = vpop.f32.mrf.mxu1  ;;  %4453 = vmatpush3.bf16.msra.mxu0 %v2173_v31 }
 0x7ba   : > { %4464 = vmatprep.subr.bf16.mxu0 %v4662_v1 }
 0x7bb   : > { %v4445_v36 = vpop.f32.mrf.mxu0  ;;  %v4450_v37 = vpop.f32.mrf.mxu1 }
 0x7bc   : > { %4455 = vmatmul.mubr.msk.bf16.vlgmr.msra.gmra.mxu0 %vm2122_vm11, %v2119_v35  ;;  %v2561_v36 = vpop.permute.xlu0 %2560 }
 0x7bd   : > { %v2166_v38 = vpop.f32.mrf.mxu1  ;;  %4466 = vmatprep.mubr.msk.bf16.mxu0 %vm4663_vm0, %v4662_v1 }
 0x7bf   : > { %v4451_v39 = vpop.f32.mrf.mxu1 }
 0x7c0   : > { %v2568_v39 = vpop.permute.xlu1 %2567 }
 0x7c1   : > { %v2257_v40 = vpop.f32.mrf.mxu1 }
 0x7c2   : > { %v2263_v41 = vpack.c.bf16 %v2257_v40, %v2257_v40 }
 0x7c3   : > { %v4462_v42 = vpop.f32.mrf.mxu1 }
 0x7c4   : > { %v2270_v33 = vsel %vm2126_vm7, %v2263_v41, 0 }
 0x7c5   : > { %v2260_v43 = vpop.f32.mrf.mxu1  ;;  %4465 = vmatpush3.bf16.msra.mxu0 %v2270_v33 }
 0x7c6   : > { %4476 = vmatprep.subr.bf16.mxu0 %v4662_v1 }
 0x7c7   : > { %v4463_v45 = vpop.f32.mrf.mxu1 }
 0x7c8   : > { %4467 = vmatmul.mubr.msk.bf16.vlgmr.msra.gmra.mxu0 %vm2122_vm11, %v4034_v44 }
 0x7c9   : > { %4478 = vmatprep.mubr.msk.bf16.mxu0 %vm4663_vm0, %v4662_v1 }
 0x87c   : > { %v2209_v46 = vpop.f32.mrf.mxu0 }
 0x87d   : > { %v2210_v52 = vadd.f32 %v2209_v46, %v2163_v34  ;;  %v4050_v46 = vld [vmem:[%s5548_s10 + $0x4] sm:$0xf] }
 0x87e   : > { %v4456_v47 = vpop.f32.mrf.mxu0 }
 0x880   : > { %v2212_v48 = vpop.f32.mrf.mxu0 }
 0x882   : > { %v4457_v50 = vpop.f32.mrf.mxu0 }
 0x888   : > { %v2306_v53 = vpop.f32.mrf.mxu0 }
 0x889   : > { %v2312_v54 = vadd.f32 %v2306_v53, %v2210_v52  ;;  %v2618_v53 = vld [vmem:[%s5548_s10] sm:$0xf] }
 0x88a   : > { %v4468_v55 = vpop.f32.mrf.mxu0 }
 0x88b   : > { %v2319_v56 = vmul.f32 %v2317_v51, %v2312_v54 }
 0x88c   : > { %v2309_v59 = vpop.f32.mrf.mxu0 }
 0x88d   : > { %v2326_v61 = vadd.f32 %v2324_v58, %v2319_v56 }
 0x88e   : > { %v4469_v62 = vpop.f32.mrf.mxu0 }
 0x88f   : > { %v2327_v63 = vmax.f32 %v2326_v61, 0.0 }
 0x891   : > { %v2328_v0 = vpack.c.bf16 %v2327_v63, %v2327_v63 }
 0x893   : > { %4473 = vmatmul.mubr.msk.bf16.vlgmr.msra.gmra.mxu1 %vm2074_vm15, %v2328_v0  ;;  %v2379_v60 = vsel %vm2126_vm7, %v2328_v0, 0 }
 0x894   : > { %4477 = vmatpush3.bf16.msra.mxu0 %v2379_v60  ;;  %4484 = vmatprep.mubr.msk.bf16.mxu1 %vm4663_vm0, %v4662_v1 }
 0x895   : > { %4488 = vmatprep.subr.bf16.mxu0 %v4662_v1 }
 0x897   : > { %4479 = vmatmul.mubr.msk.bf16.vlgmr.msra.gmra.mxu0 %vm2122_vm11, %v4039_v9 }
 0x898   : > { %4489 = vmatpush3.bf16.msk.msra.mxu0 %vm5256_vm12, %v4664_v13  ;;  %4490 = vmatprep.mubr.msk.bf16.mxu0 %vm4663_vm0, %v4662_v1 }
 0x899   : > { %4500 = vmatprep.subr.bf16.mxu0 %v4662_v1 }
 0x89f   : > { %4491 = vmatmul.mubr.msk.bf16.vlgmr.msra.gmra.mxu0 %vm2074_vm15, %v2328_v0  ;;  %v4056_v0 = vld [vmem:[%s5548_s10 + $0x8] sm:$0xf] }
 0x8a0   : > { %4501 = vmatpush3.bf16.msk.msra.mxu0 %vm5226_vm6, %v4664_v13  ;;  %4502 = vmatprep.mubr.msk.bf16.mxu0 %vm4663_vm0, %v4662_v1 }
 0x8a1   : > { %4512 = vmatprep.subr.bf16.mxu0 %v4662_v1 }
 0x953   : > { %v2366_v30 = vpop.f32.mrf.mxu1 }
 0x954   : > { %v2372_v10 = vpack.c.bf16 %v2366_v30, %v2366_v30 }
 0x955   : > { %v4474_v15 = vpop.f32.mrf.mxu1 }
 0x956   : > { %v2425_v17 = vsel %vm2126_vm7, %v2372_v10, 0 }
 0x957   : > { %v2369_v19 = vpop.f32.mrf.mxu1  ;;  %v2415_v4 = vpop.f32.mrf.mxu0  ;;  %4483 = vmatpush3.bf16.msra.mxu1 %v2425_v17 }
 0x958   : > { %4494 = vmatprep.subr.bf16.mxu1 %v4662_v1 }
 0x959   : > { %v4475_v7 = vpop.f32.mrf.mxu1  ;;  %v4480_v8 = vpop.f32.mrf.mxu0 }
 0x95a   : > { %4485 = vmatmul.mubr.msk.bf16.vlgmr.msra.gmra.mxu1 %vm2122_vm11, %v2373_v5  ;;  %v2806_v5 = vpop.permute.xlu0 %2805 }
 0x95b   : > { %v2418_v11 = vpop.f32.mrf.mxu0  ;;  %4496 = vmatprep.mubr.msk.bf16.mxu1 %vm4663_vm0, %v4662_v1 }
 0x95c   : > { %v2813_v11 = vpop.permute.xlu1 %2812 }
 0x95d   : > { %v4481_v12 = vpop.f32.mrf.mxu0 }
 0x95f   : > { %v2501_v16 = vpop.f32.mrf.mxu0 }
 0x960   : > { %v2507_v20 = vpack.c.bf16 %v2501_v16, %v2501_v16 }
 0x961   : > { %v4492_v22 = vpop.f32.mrf.mxu0 }
 0x962   : > { %v2514_v23 = vsel %vm2126_vm7, %v2507_v20, 0 }
 0x963   : > { %v2504_v24 = vpop.f32.mrf.mxu0  ;;  %4495 = vmatpush3.bf16.msra.mxu1 %v2514_v23 }
 0x964   : > { %4506 = vmatprep.subr.bf16.mxu1 %v4662_v1 }
 0x965   : > { %v4493_v26 = vpop.f32.mrf.mxu0 }
 0x966   : > { %4497 = vmatmul.mubr.msk.bf16.vlgmr.msra.gmra.mxu1 %vm2122_vm11, %v4045_v25  ;;  %v4061_v25 = vld [vmem:[%s5551_s13 + $0x4] sm:$0xf] }
 0x967   : > { %4508 = vmatprep.mubr.msk.bf16.mxu1 %vm4663_vm0, %v4662_v1 }
 0xa1a   : > { %v2461_v27 = vpop.f32.mrf.mxu1 }
 0xa1b   : > { %v2462_v32 = vadd.f32 %v2461_v27, %v2415_v4 }
 0xa1c   : > { %v4486_v28 = vpop.f32.mrf.mxu1 }
 0xa1e   : > { %v2464_v29 = vpop.f32.mrf.mxu1 }
 0xa20   : > { %v4487_v31 = vpop.f32.mrf.mxu1 }
 0xa26   : > { %v2550_v34 = vpop.f32.mrf.mxu1 }
 0xa27   : > { %v2556_v35 = vadd.f32 %v2550_v34, %v2462_v32 }
 0xa28   : > { %v4498_v37 = vpop.f32.mrf.mxu1 }
 0xa29   : > { %v2563_v38 = vmul.f32 %v2561_v36, %v2556_v35 }
 0xa2a   : > { %v2553_v40 = vpop.f32.mrf.mxu1 }
 0xa2b   : > { %v2570_v41 = vadd.f32 %v2568_v39, %v2563_v38 }
 0xa2c   : > { %v4499_v42 = vpop.f32.mrf.mxu1 }
 0xa2d   : > { %v2571_v33 = vadd.f32 %v2570_v41, %v5237_v49 }
 0xa2f   : > { %v5362_v43 = vmax.f32 %v2571_v33, 0.0  ;;  %v4067_v33 = vld [vmem:[%s5551_s13 + $0x8] sm:$0xf] }
 0xa31   : > { %v2573_v44 = vpack.c.bf16 %v5362_v43, %v5362_v43 }
 0xa33   : > { %4503 = vmatmul.mubr.msk.bf16.vlgmr.msra.gmra.mxu0 %vm2074_vm15, %v2573_v44  ;;  %v2624_v45 = vsel %vm2126_vm7, %v2573_v44, 0 }
 0xa34   : > { %4507 = vmatpush3.bf16.msra.mxu1 %v2624_v45  ;;  %4514 = vmatprep.mubr.msk.bf16.mxu0 %vm4663_vm0, %v4662_v1  ;;  %v3063_v45 = vmul.u32 2, %v4809_v3 }
 0xa35   : > { %4518 = vmatprep.subr.bf16.mxu1 %v4662_v1 }
 0xa36   : > { %vm3118_vm1 = vcmp.eq.s32.totalorder %v4807_v2, %v3063_v45  ;;  %vm3119_vm2 = vcmp.eq.s32.totalorder %v4855_v14, %v3063_v45 }
 0xa37   : > { %4509 = vmatmul.mubr.msk.bf16.vlgmr.msra.gmra.mxu1 %vm2122_vm11, %v4050_v46  ;;  %v3064_v46 = vadd.s32 4294967295, %v3063_v45  ;;  %vm4076_vm4 = vmpackc.low %vm3119_vm2, %vm3118_vm1 }
 0xa38   : > { %4519 = vmatpush3.bf16.msk.msra.mxu1 %vm5256_vm12, %v4664_v13  ;;  %4520 = vmatprep.mubr.msk.bf16.mxu1 %vm4663_vm0, %v4662_v1 }
 0xa39   : > { %4530 = vmatprep.subr.bf16.mxu1 %v4662_v1  ;;  %vm3065_vm13 = vcmp.eq.s32.totalorder %v4807_v2, %v3064_v46  ;;  %vm3066_vm14 = vcmp.eq.s32.totalorder %v4855_v14, %v3064_v46 }
 0xa3a   : > { %vm4071_vm3 = vmpackc.low %vm3066_vm14, %vm3065_vm13 }
 0xa3f   : > { %4521 = vmatmul.mubr.msk.bf16.vlgmr.msra.gmra.mxu1 %vm2074_vm15, %v2573_v44 }
 0xa40   : > { %4531 = vmatpush3.bf16.msk.msra.mxu1 %vm5226_vm6, %v4664_v13  ;;  %4532 = vmatprep.mubr.msk.bf16.mxu1 %vm4663_vm0, %v4662_v1 }
 0xa41   : > { %4542 = vmatprep.subr.bf16.mxu1 %v4662_v1 }
 0xaf3   : > { %v2611_v49 = vpop.f32.mrf.mxu0 }
 0xaf4   : > { %v2617_v47 = vpack.c.bf16 %v2611_v49, %v2611_v49 }
 0xaf5   : > { %v4504_v48 = vpop.f32.mrf.mxu0 }
 0xaf6   : > { %v2670_v50 = vsel %vm2126_vm7, %v2617_v47, 0 }
 0xaf7   : > { %v2614_v51 = vpop.f32.mrf.mxu0  ;;  %v2660_v52 = vpop.f32.mrf.mxu1  ;;  %4513 = vmatpush3.bf16.msra.mxu0 %v2670_v50 }
 0xaf8   : > { %4524 = vmatprep.subr.bf16.mxu0 %v4662_v1 }
 0xaf9   : > { %v4505_v21 = vpop.f32.mrf.mxu0  ;;  %v4510_v54 = vpop.f32.mrf.mxu1 }
 0xafa   : > { %4515 = vmatmul.mubr.msk.bf16.vlgmr.msra.gmra.mxu0 %vm2122_vm11, %v2618_v53  ;;  %v3050_v53 = vpop.permute.xlu0 %3049 }
 0xafb   : > { %v2663_v55 = vpop.f32.mrf.mxu1  ;;  %4526 = vmatprep.mubr.msk.bf16.mxu0 %vm4663_vm0, %v4662_v1 }
 0xafc   : > { %v3057_v55 = vpop.permute.xlu1 %3056 }
 0xafd   : > { %v4511_v56 = vpop.f32.mrf.mxu1 }
 0xaff   : > { %v2746_v58 = vpop.f32.mrf.mxu1 }
 0xb00   : > { %v2752_v59 = vpack.c.bf16 %v2746_v58, %v2746_v58 }
 0xb01   : > { %v4522_v61 = vpop.f32.mrf.mxu1 }
 0xb02   : > { %v2759_v62 = vsel %vm2126_vm7, %v2752_v59, 0 }
 0xb03   : > { %v2749_v63 = vpop.f32.mrf.mxu1  ;;  %4525 = vmatpush3.bf16.msra.mxu0 %v2759_v62 }
 0xb04   : > { %4536 = vmatprep.subr.bf16.mxu0 %v4662_v1 }
 0xb05   : > { %v4523_v60 = vpop.f32.mrf.mxu1 }
 0xb06   : > { %4527 = vmatmul.mubr.msk.bf16.vlgmr.msra.gmra.mxu0 %vm2122_vm11, %v4056_v0  ;;  %v3273_v0 = vadd.s32 1, %v3063_v45 }
 0xb07   : > { %4538 = vmatprep.mubr.msk.bf16.mxu0 %vm4663_vm0, %v4662_v1 }
 0xb08   : > { %vm3274_vm5 = vcmp.eq.s32.totalorder %v4807_v2, %v3273_v0  ;;  %vm3275_vm6 = vcmp.eq.s32.totalorder %v4855_v14, %v3273_v0  ;;  %v4651_v2 = vld [vmem:[%s5560_s22] sm:$0xff]  }
 0xb09   : > { %vm4087_vm9 = vmpackc.low %vm3275_vm6, %vm3274_vm5 }
 0xbba   : > { %v2706_v9 = vpop.f32.mrf.mxu0 }
 0xbbb   : > { %v2707_v17 = vadd.f32 %v2706_v9, %v2660_v52 }
 0xbbc   : > { %v4516_v30 = vpop.f32.mrf.mxu0 }
 0xbbe   : > { %v2709_v10 = vpop.f32.mrf.mxu0 }
 0xbc0   : > { %v4517_v15 = vpop.f32.mrf.mxu0 }
 0xbc6   : > { %v2795_v19 = vpop.f32.mrf.mxu0 }
 0xbc7   : > { %v2801_v4 = vadd.f32 %v2795_v19, %v2707_v17 }
 0xbc8   : > { %v4528_v7 = vpop.f32.mrf.mxu0 }
 0xbc9   : > { %v2808_v8 = vmul.f32 %v2806_v5, %v2801_v4  ;;  %v4647_v4 = vld [vmem:[%s5554_s16 + $0x8] sm:$0xff]   ;;  %v4648_v5 = vld [vmem:[%s5554_s16] sm:$0xff]  }
 0xbca   : > { %v2798_v12 = vpop.f32.mrf.mxu0 }
 0xbcb   : > { %v2815_v16 = vadd.f32 %v2813_v11, %v2808_v8 }
 0xbcc   : > { %v4529_v20 = vpop.f32.mrf.mxu0 }
 0xbcd   : > { %v2816_v22 = vmax.f32 %v2815_v16, 0.0 }
 0xbcf   : > { %v2817_v23 = vpack.c.bf16 %v2816_v22, %v2816_v22 }
 0xbd1   : > { %4533 = vmatmul.mubr.msk.bf16.vlgmr.msra.gmra.mxu1 %vm2074_vm15, %v2817_v23  ;;  %v2868_v24 = vsel %vm2126_vm7, %v2817_v23, 0 }
 0xbd2   : > { %4537 = vmatpush3.bf16.msra.mxu0 %v2868_v24  ;;  %4544 = vmatprep.mubr.msk.bf16.mxu1 %vm4663_vm0, %v4662_v1 }
 0xbd3   : > { %4548 = vmatprep.subr.bf16.mxu0 %v4662_v1 }
 0xbd5   : > { %4539 = vmatmul.mubr.msk.bf16.vlgmr.msra.gmra.mxu0 %vm2122_vm11, %v4061_v25 }
 0xbd6   : > { %4549 = vmatpush3.bf16.msk.msra.mxu0 %vm5256_vm12, %v4664_v13  ;;  %4550 = vmatprep.mubr.msk.bf16.mxu0 %vm4663_vm0, %v4662_v1 }
 0xbd7   : > { %4560 = vmatprep.subr.bf16.mxu0 %v4662_v1 }
 0xbdd   : > { %4551 = vmatmul.mubr.msk.bf16.vlgmr.msra.gmra.mxu0 %vm2074_vm15, %v2817_v23 }
 0xbde   : > { %4562 = vmatprep.mubr.msk.bf16.mxu0 %vm4663_vm0, %v4662_v1  ;;  %4561 = vmatpush3.bf16.msk.msra.mxu0 %vm4071_vm3, %v4664_v13 }
 0xbdf   : > { %4572 = vmatprep.subr.bf16.mxu0 %v4662_v1 }
 0xc91   : > { %v2855_v26 = vpop.f32.mrf.mxu1 }
 0xc92   : > { %v2861_v27 = vpack.c.bf16 %v2855_v26, %v2855_v26 }
 0xc93   : > { %v4534_v28 = vpop.f32.mrf.mxu1 }
 0xc94   : > { %v2914_v29 = vsel %vm2126_vm7, %v2861_v27, 0 }
 0xc95   : > { %v2858_v31 = vpop.f32.mrf.mxu1  ;;  %v2904_v32 = vpop.f32.mrf.mxu0  ;;  %4543 = vmatpush3.bf16.msra.mxu1 %v2914_v29 }
 0xc96   : > { %4554 = vmatprep.subr.bf16.mxu1 %v4662_v1 }
 0xc97   : > { %v4535_v34 = vpop.f32.mrf.mxu1  ;;  %v4540_v35 = vpop.f32.mrf.mxu0 }
 0xc98   : > { %4545 = vmatmul.mubr.msk.bf16.vlgmr.msra.gmra.mxu1 %vm2122_vm11, %v2862_v6  ;;  %v4649_v6 = vld [vmem:[%s5554_s16 + $0x10] sm:$0xff]  }
 0xc99   : > { %v2907_v36 = vpop.f32.mrf.mxu0  ;;  %4556 = vmatprep.mubr.msk.bf16.mxu1 %vm4663_vm0, %v4662_v1 }
 0xc9a   : > { %v4021_v36 = vsel %vm2067_vm10, 1.0, %v4662_v1 }
 0xc9b   : > { %v4541_v37 = vpop.f32.mrf.mxu0 }
 0xc9c   : > { %v3410_v37 = vpack.c.bf16 %v4021_v36, %v4021_v36 }
 0xc9d   : > { %v2990_v38 = vpop.f32.mrf.mxu0 }
 0xc9e   : > { %v2996_v39 = vpack.c.bf16 %v2990_v38, %v2990_v38  ;;  %v3415_v38 = vsel %vm2126_vm7, %v3410_v37, 0 }
 0xc9f   : > { %v4552_v40 = vpop.f32.mrf.mxu0 }
 0xca0   : > { %v3003_v41 = vsel %vm2126_vm7, %v2996_v39, 0  ;;  %v3384_v39 = vpop.permute.xlu0 %3383 }
 0xca1   : > { %v2993_v42 = vpop.f32.mrf.mxu0  ;;  %4555 = vmatpush3.bf16.msra.mxu1 %v3003_v41 }
 0xca2   : > { %4566 = vmatprep.subr.bf16.mxu1 %v4662_v1  ;;  %v3389_v42 = vpop.permute.xlu1 %3388 }
 0xca3   : > { %v4553_v44 = vpop.f32.mrf.mxu0 }
 0xca4   : > { %4557 = vmatmul.mubr.msk.bf16.vlgmr.msra.gmra.mxu1 %vm2122_vm11, %v4067_v33 }
 0xca5   : > { %4568 = vmatprep.mubr.msk.bf16.mxu1 %vm4663_vm0, %v4662_v1  ;;  %4567 = vmatpush3.bf16.msk.msra.mxu1 %vm4076_vm4, %v4664_v13 }
 0xca6   : > { %4578 = vmatprep.subr.bf16.mxu1 %v4662_v1  ;;  %v3403_v57 = vpop.permute.xlu1 %3402 }
 0xd58   : > { %v2950_v3 = vpop.f32.mrf.mxu1 }
 0xd59   : > { %v2951_v50 = vadd.f32 %v2950_v3, %v2904_v32  ;;  %v3398_v3 = vpop.permute.xlu0 %3397 }
 0xd5a   : > { %v4546_v49 = vpop.f32.mrf.mxu1 }
 0xd5c   : > { %v2953_v47 = vpop.f32.mrf.mxu1 }
 0xd5e   : > { %v4547_v48 = vpop.f32.mrf.mxu1 }
 0xd64   : > { %v3039_v51 = vpop.f32.mrf.mxu1 }
 0xd65   : > { %v3045_v52 = vadd.f32 %v3039_v51, %v2951_v50  ;;  %v4029_v51 = vsel %vm2216_vm8, 1.0, %v4662_v1 }
 0xd66   : > { %v4558_v21 = vpop.f32.mrf.mxu1 }
 0xd67   : > { %v3052_v54 = vmul.f32 %v3050_v53, %v3045_v52  ;;  %v3562_v21 = vpack.c.bf16 %v4029_v51, %v4029_v51 }
 0xd68   : > { %v3042_v56 = vpop.f32.mrf.mxu1 }
 0xd69   : > { %v3059_v58 = vadd.f32 %v3057_v55, %v3052_v54  ;;  %v4650_v55 = vld [vmem:[%s5557_s19 + $0x8] sm:$0xff]   ;;  %v3564_v56 = vsel %vm2126_vm7, %v3562_v21, 0 }
 0xd6a   : > { %v4559_v59 = vpop.f32.mrf.mxu1 }
 0xd6b   : > { %v3060_v61 = vadd.f32 %v3059_v58, %v5362_v43 }
 0xd6d   : > { %v3061_v62 = vmax.f32 %v3060_v61, 0.0 }
 0xd6f   : > { %v3062_v63 = vpack.c.bf16 %v3061_v62, %v3061_v62 }
 0xd71   : > { %4563 = vmatmul.mubr.msk.bf16.vlgmr.msra.gmra.mxu0 %vm2074_vm15, %v3062_v63  ;;  %4569 = vmatmul.mubr.msk.bf16.vlgmr.msra.gmra.mxu1 %vm2074_vm15, %v3062_v63 }
 0xd72   : > { %4574 = vmatprep.mubr.msk.bf16.mxu0 %vm4663_vm0, %v4662_v1  ;;  %4580 = vmatprep.mubr.msk.bf16.mxu1 %vm4663_vm0, %v4662_v1 }
 0xe31   : > { %v3109_v60 = vpop.f32.mrf.mxu0  ;;  %v3159_v9 = vpop.f32.mrf.mxu1 }
 0xe32   : > { %v3115_v30 = vpack.c.bf16 %v3109_v60, %v3109_v60  ;;  %v3165_v10 = vpack.c.bf16 %v3159_v9, %v3159_v9  ;;  %v4652_v60 = vld [vmem:[%s5557_s19] sm:$0xff]  }
 0xe33   : > { %v4564_v15 = vpop.f32.mrf.mxu0  ;;  %v4570_v17 = vpop.f32.mrf.mxu1 }
 0xe34   : > { %v3230_v43 = vsel %vm2126_vm7, %v3115_v30, 0  ;;  %v5458_v19 = vsel %vm2126_vm7, %v3165_v10, 0 }
 0xe35   : > { %v3112_v7 = vpop.f32.mrf.mxu0  ;;  %v3162_v8 = vpop.f32.mrf.mxu1  ;;  %4573 = vmatpush3.bf16.msra.mxu0 %v5458_v19  ;;  %4579 = vmatpush3.bf16.msra.mxu1 %v3230_v43 }
 0xe36   : > { %4584 = vmatprep.subr.bf16.mxu0 %v4662_v1  ;;  %4590 = vmatprep.subr.bf16.mxu1 %v4662_v1 }
 0xe37   : > { %v4565_v14 = vpop.f32.mrf.mxu0  ;;  %v4571_v11 = vpop.f32.mrf.mxu1 }
 0xe38   : > { %4575 = vmatmul.mubr.msk.bf16.vlgmr.msra.gmra.mxu0 %vm2122_vm11, %v4647_v4  ;;  %4581 = vmatmul.mubr.msk.bf16.vlgmr.msra.gmra.mxu1 %vm2122_vm11, %v4648_v5  ;;  %v4653_v4 = vld [vmem:[%s5557_s19 + $0x10] sm:$0xff]   ;;  %v3667_v11 = vpop.permute.xlu0 %3666 }
 0xe39   : > { %4585 = vmatpush3.bf16.msk.msra.mxu0 %vm4087_vm9, %v4664_v13  ;;  %4586 = vmatprep.mubr.msk.bf16.mxu0 %vm4663_vm0, %v4662_v1 }
 0xe3a   : > { %4592 = vmatprep.mubr.msk.bf16.mxu1 %vm4663_vm0, %v4662_v1  ;;  %4596 = vmatprep.subr.bf16.mxu0 %v4662_v1 }
 0xe40   : > { %4587 = vmatmul.mubr.msk.bf16.vlgmr.msra.gmra.mxu0 %vm2074_vm15, %v3062_v63 }
 0xe41   : > { %4598 = vmatprep.mubr.msk.bf16.mxu0 %vm4663_vm0, %v4662_v1  ;;  %4597 = vmatpush3.bf16.msra.mxu0 %v3415_v38 }
 0xe42   : > { %4608 = vmatprep.subr.bf16.mxu0 %v4662_v1 }
 0xef8   : > { %v3214_v12 = vpop.f32.mrf.mxu0  ;;  %v3266_v16 = vpop.f32.mrf.mxu1 }
 0xef9   : > { %v3267_v20 = vadd.f32 %v3266_v16, %v3214_v12  ;;  %v3672_v16 = vpop.permute.xlu1 %3671 }
 0xefa   : > { %v4576_v22 = vpop.f32.mrf.mxu0  ;;  %v4582_v23 = vpop.f32.mrf.mxu1 }
 0xefc   : > { %v3217_v24 = vpop.f32.mrf.mxu0  ;;  %v3269_v13 = vpop.f32.mrf.mxu1 }
 0xefd   : > { %v3270_v25 = vadd.f32 %v3269_v13, %v3217_v24  ;;  %v3751_v24 = vpop.permute.xlu1 %3750 }
 0xefe   : > { %v4577_v26 = vpop.f32.mrf.mxu0  ;;  %v4583_v27 = vpop.f32.mrf.mxu1 }
 0xf00   : > { %v3315_v28 = vpop.f32.mrf.mxu0 }
 0xf01   : > { %v3321_v29 = vpack.c.bf16 %v3315_v28, %v3315_v28 }
 0xf02   : > { %v4588_v31 = vpop.f32.mrf.mxu0 }
 0xf03   : > { %v3334_v32 = vsel %vm2126_vm7, %v3321_v29, 0  ;;  %v3686_v29 = vpop.permute.xlu1 %3685 }
 0xf04   : > { %v3318_v34 = vpop.f32.mrf.mxu0  ;;  %4591 = vmatpush3.bf16.msra.mxu1 %v3334_v32 }
 0xf05   : > { %4602 = vmatprep.subr.bf16.mxu1 %v4662_v1 }
 0xf06   : > { %v4589_v35 = vpop.f32.mrf.mxu0 }
 0xf07   : > { %4593 = vmatmul.mubr.msk.bf16.vlgmr.msra.gmra.mxu1 %vm2122_vm11, %v4649_v6 }
 0xf08   : > { %4604 = vmatprep.mubr.msk.bf16.mxu1 %vm4663_vm0, %v4662_v1 }
 0xfc7   : > { %v3370_v40 = vpop.f32.mrf.mxu1 }
 0xfc8   : > { %v3377_v41 = vadd.f32 %v3370_v40, %v3267_v20 }
 0xfc9   : > { %v4594_v33 = vpop.f32.mrf.mxu1 }
 0xfca   : > { %v3391_v44 = vmul.f32 %v3384_v39, %v3377_v41  ;;  %v3765_v33 = vpop.permute.xlu1 %3764 }
 0xfcb   : > { %v3373_v45 = vpop.f32.mrf.mxu1 }
 0xfcc   : > { %v3378_v46 = vadd.f32 %v3373_v45, %v3270_v25  ;;  %v3405_v47 = vadd.f32 %v3398_v3, %v3391_v44 }
 0xfcd   : > { %v4595_v49 = vpop.f32.mrf.mxu1 }
 0xfce   : > { %v3392_v48 = vmul.f32 %v3389_v42, %v3378_v46  ;;  %v3407_v52 = vmax.f32 %v3405_v47, 0.0 }
 0xfd0   : > { %v3406_v50 = vadd.f32 %v3403_v57, %v3392_v48 }
 0xfd2   : > { %v3408_v53 = vmax.f32 %v3406_v50, 0.0 }
 0xfd4   : > { %v3409_v54 = vpack.c.bf16 %v3408_v53, %v3407_v52 }
 0xfd6   : > { %4599 = vmatmul.mubr.msk.bf16.vlgmr.msra.gmra.mxu0 %vm2122_vm11, %v3409_v54  ;;  %4603 = vmatpush3.bf16.msra.mxu1 %v3409_v54 }
 0xfd7   : > { %4614 = vmatprep.subr.bf16.mxu1 %v4662_v1  ;;  %4610 = vmatprep.mubr.msk.bf16.mxu0 %vm4663_vm0, %v4662_v1 }
 0xfd9   : > { %4605 = vmatmul.mubr.msk.bf16.vlgmr.msra.gmra.mxu1 %vm2074_vm15, %v4650_v55 }
 0xfda   : > { %4615 = vmatpush3.bf16.msra.mxu1 %v3564_v56  ;;  %4616 = vmatprep.mubr.msk.bf16.mxu1 %vm4663_vm0, %v4662_v1 }
 0xfdb   : > { %4626 = vmatprep.subr.bf16.mxu1 %v4662_v1 }
 0xfe1   : > { %4617 = vmatmul.mubr.msk.bf16.vlgmr.msra.gmra.mxu1 %vm2122_vm11, %v3409_v54 }
 0xfe2   : > { %4627 = vmatpush3.bf16.msra.mxu1 %v5458_v19  ;;  %4628 = vmatprep.mubr.msk.bf16.mxu1 %vm4663_vm0, %v4662_v1 }
 0xfe9   : > { %4629 = vmatmul.mubr.msk.bf16.vlgmr.msra.gmra.mxu1 %vm2122_vm11, %v4651_v2 }
0x1096   : > { %v3451_v18 = vpop.f32.mrf.mxu0 }
0x1098   : > { %v4600_v58 = vpop.f32.mrf.mxu0 }
0x1099   : > { %v3506_v59 = vpop.f32.mrf.mxu1 }
0x109a   : > { %v3454_v61 = vpop.f32.mrf.mxu0 }
0x109b   : > { %v3458_v62 = vpack.c.bf16 %v3454_v61, %v3451_v18  ;;  %v4606_v63 = vpop.f32.mrf.mxu1 }
0x109c   : > { %v4601_v0 = vpop.f32.mrf.mxu0 }
0x109d   : > { %v3509_v9 = vpop.f32.mrf.mxu1  ;;  %4609 = vmatpush3.bf16.msra.mxu0 %v3458_v62 }
0x109e   : > { %4620 = vmatprep.subr.bf16.mxu0 %v4662_v1 }
0x109f   : > { %v4607_v30 = vpop.f32.mrf.mxu1 }
0x10a0   : > { %4611 = vmatmul.mubr.msk.bf16.vlgmr.msra.gmra.mxu0 %vm2074_vm15, %v4652_v60 }
0x10a1   : > { %v3600_v10 = vpop.f32.mrf.mxu1  ;;  %4622 = vmatprep.mubr.msk.bf16.mxu0 %vm4663_vm0, %v4662_v1  ;;  %v3746_v1 = vpop.permute.xlu0 %3745  ;;  %vm3782_vm0 = vcmask 7168  }
0x10a3   : > { %v4618_v15 = vpop.f32.mrf.mxu1 }
0x10a5   : > { %v3603_v17 = vpop.f32.mrf.mxu1  ;;  %v3681_v13 = vpop.permute.xlu0 %3680 }
0x10a6   : > { %v3607_v43 = vpack.c.bf16 %v3603_v17, %v3600_v10 }
0x10a7   : > { %v4619_v19 = vpop.f32.mrf.mxu1 }
0x10a8   : > { %4621 = vmatpush3.bf16.msra.mxu0 %v3607_v43 }
0x10a9   : > { %v3734_v5 = vpop.f32.mrf.mxu1  ;;  %v3760_v34 = vpop.permute.xlu0 %3759 }
0x10aa   : > { %v3753_v27 = vmul.f32 %v3746_v1, %v3734_v5 }
0x10ab   : > { %4623 = vmatmul.mubr.msk.bf16.vlgmr.msra.gmra.mxu0 %vm2074_vm15, %v4653_v4  ;;  %v4630_v7 = vpop.f32.mrf.mxu1 }
0x10ac   : > { %v3767_v36 = vadd.f32 %v3760_v34, %v3753_v27 }
0x10ad   : > { %v3737_v8 = vpop.f32.mrf.mxu1 }
0x10ae   : > { %v3754_v37 = vmul.f32 %v3751_v24, %v3737_v8 }
0x10af   : > { %v4631_v14 = vpop.f32.mrf.mxu1 }
0x10b0   : > { %v3768_v44 = vadd.f32 %v3765_v33, %v3754_v37 }
0x1160   : > { %v3555_v12 = vpop.f32.mrf.mxu0 }
0x1161   : > { %v3556_v25 = vadd.f32 %v3555_v12, %v3506_v59 }
0x1162   : > { %v4612_v20 = vpop.f32.mrf.mxu0 }
0x1164   : > { %v3558_v22 = vpop.f32.mrf.mxu0 }
0x1165   : > { %v3559_v32 = vadd.f32 %v3558_v22, %v3509_v9 }
0x1166   : > { %v4613_v23 = vpop.f32.mrf.mxu0 }
0x116b   : > { %v3653_v26 = vpop.f32.mrf.mxu0 }
0x116c   : > { %v3660_v28 = vadd.f32 %v3653_v26, %v3556_v25 }
0x116d   : > { %v4624_v31 = vpop.f32.mrf.mxu0 }
0x116e   : > { %v3674_v6 = vmul.f32 %v3667_v11, %v3660_v28 }
0x116f   : > { %v3656_v35 = vpop.f32.mrf.mxu0 }
0x1170   : > { %v3688_v38 = vadd.f32 %v3681_v13, %v3674_v6  ;;  %v3661_v39 = vadd.f32 %v3656_v35, %v3559_v32 }
0x1171   : > { %v4625_v40 = vpop.f32.mrf.mxu0 }
0x1172   : > { %v3675_v41 = vmul.f32 %v3672_v16, %v3661_v39  ;;  %v3769_v42 = vadd.f32 %v3767_v36, %v3688_v38 }
0x1174   : > { %v3689_v45 = vadd.f32 %v3686_v29, %v3675_v41  ;;  %v3771_v46 = vmax.f32 %v3769_v42, 0.0 }
0x1176   : > { %v3773_v3 = vsel %vm2122_vm11, %v3771_v46, 0.0  ;;  %v3770_v49 = vadd.f32 %v3768_v44, %v3689_v45 }
0x1177   : > { %3774 = vadd.xlane.f32.xlu0 %v3773_v3 }
0x1178   : > { %v3772_v47 = vmax.f32 %v3770_v49, 0.0 }
0x117a   : > { %v3776_v48 = vsel %vm2122_vm11, %v3772_v47, 0.0 }
0x117b   : > { %3777 = vadd.xlane.f32.xlu1 %v3776_v48 }
0x1200   : > { %v3775_v57 = vpop.xlane.xlu0 %3774 }
0x1201   : > { %v3780_v50 = vmul.f32 0.125, %v3775_v57 }
0x1203   : > { %3783 = vst.msk [vmem:[%s761_s30] sm:$0xff] %vm3782_vm0, %v3780_v50 }
0x1204   : > { %v3778_v51 = vpop.xlane.xlu1 %3777 }
0x1205   : > { %v3781_v52 = vmul.f32 0.125, %v3778_v51 }
0x1207   : > { %3784 = vst.msk [vmem:[%s761_s30 + $0x8] sm:$0xff] %vm3782_vm0, %v3781_v52 }
0x1208 PF: > { %s35_s29 = sadd.s32 1, %s4660_s29  }
0x1209   : > { %p32_p4 = scmp.ge.s32.totalorder %s35_s29, 4  }
0x120b   :  { %34 = sbr.rel (!%p32_p4) target bundleno = 13 (0xd), region = 168 }

</bundles_post_ra>
